<compile_context>
chip_gen: v6e
topology: v6e:2x2x1
jax: 0.10.0
libtpu: 0.0.40
codegen_flags: <defaults>
</compile_context>

<pallas_src>
import functools
import math

import jax
import jax.numpy as jnp
from jax import lax
from jax.experimental import pallas as pl
from jax.experimental.pallas import tpu as pltpu


# ---------------------------------------------------------------------------
# helpers
# ---------------------------------------------------------------------------
def _matmul_nt(x, w):
    # x: (M, K) bf16, w: (N, K) bf16 [torch nn.Linear layout]  ->  (M, N) f32
    # bf16 operands, f32 accumulation on the MXU.
    return lax.dot_general(x, w, (((1,), (1,)), ((), ())),
                           preferred_element_type=jnp.float32)


def _layernorm(x_bf16, gamma, beta, eps=1e-5):
    # bf16 residual stream in, f32 statistics (biased variance, like PyTorch),
    # bf16 out.
    xf = x_bf16.astype(jnp.float32)
    mu = jnp.mean(xf, axis=-1, keepdims=True)
    xc = xf - mu
    var = jnp.mean(xc * xc, axis=-1, keepdims=True)
    y = xc * lax.rsqrt(var + eps) * gamma + beta
    return y.astype(jnp.bfloat16)


@functools.lru_cache(maxsize=None)
def _tpu_config():
    """(vmem_limit_bytes, single_buffer_weights) — generation aware."""
    try:
        cap = pltpu.get_tpu_info().vmem_capacity_bytes
    except Exception:
        return 32 * 1024 * 1024, False            # unknown backend: conservative
    if cap >= 100 * 1024 * 1024:                  # v5e / v6e: 128 MiB physical
        return 100 * 1024 * 1024, False
    # v7x: 64 MiB physical -> smaller scoped budget, and single-buffer the
    # constant-index weight blocks to reclaim the dead second copy.
    return 48 * 1024 * 1024, True


def _pick_block_seqs(n_seq, seq_len, target_rows=256):
    """Sequences per grid step: fill ~256 MXU rows, keep >=2 steps, divide N."""
    tb = max(1, target_rows // max(seq_len, 1))
    if n_seq >= 2:
        tb = min(tb, n_seq // 2)      # >= 2 grid steps so v7x megacore splits
    tb = max(1, min(tb, n_seq))
    while n_seq % tb:
        tb -= 1
    return tb


# ---------------------------------------------------------------------------
# fused encoder-layer kernel: one grid step == TB sequences
# ---------------------------------------------------------------------------
def _encoder_layer_kernel(x_ref, pos_ref,
                          wqkv_ref, bqkv_ref, wo_ref, bo_ref,
                          g1_ref, beta1_ref,
                          wff1_ref, bff1_ref, wff2_ref, bff2_ref,
                          g2_ref, beta2_ref,
                          o_ref, attn_ref, *, n_heads):
    f32 = jnp.float32
    bf16 = jnp.bfloat16

    TB, L, D = x_ref.shape
    hd = D // n_heads
    scale = 1.0 / math.sqrt(hd)

    # embedding (already gathered) + positional encoding; residual stays bf16.
    x = x_ref[...] + pos_ref[...]                       # (TB, L, D) bf16
    xr = x.reshape(TB * L, D)                           # flat rows for MXU fill

    # --- fused QKV projection: one wide MXU pass over TB*L rows -------------
    qkv = _matmul_nt(xr, wqkv_ref[...]) + bqkv_ref[...]  # (TB*L, 3D) f32
    q = qkv[:, :D] * scale          # fold 1/sqrt(hd) into q (cheap, pre-bf16)
    k = qkv[:, D:2 * D]
    v = qkv[:, 2 * D:]
    q3 = q.reshape(TB, L, D)
    k3 = k.reshape(TB, L, D)
    v3 = v.reshape(TB, L, D)

    # --- attention: batched over sequences, heads statically unrolled -------
    # TODO(synk): no padding/attention mask (reference bert_model unspecified).
    for h in range(n_heads):
        sl = slice(h * hd, (h + 1) * hd)
        qh = q3[:, :, sl].astype(bf16)
        kh = k3[:, :, sl].astype(bf16)
        vh = v3[:, :, sl].astype(bf16)
        s = jnp.einsum("bld,bmd->blm", qh, kh,
                       preferred_element_type=f32)      # (TB, L, L)
        s = s - jnp.max(s, axis=-1, keepdims=True)
        p = jnp.exp(s)
        p = p * pl.reciprocal(jnp.sum(p, axis=-1, keepdims=True), approx=True)
        oh = jnp.einsum("blm,bmd->bld", p.astype(bf16), vh,
                        preferred_element_type=f32)     # (TB, L, hd)
        # write straight into the VMEM slab (no lane-axis concatenate)
        attn_ref[:, :, sl] = oh.astype(bf16)

    attn = attn_ref[...].reshape(TB * L, D)             # bf16

    # --- output projection + residual + layernorm ---------------------------
    o = _matmul_nt(attn, wo_ref[...]) + bo_ref[...]     # f32
    x1 = _layernorm(xr + o.astype(bf16), g1_ref[...], beta1_ref[...])

    # --- feed-forward + residual + layernorm --------------------------------
    hid = _matmul_nt(x1, wff1_ref[...]) + bff1_ref[...]
    hid = jnp.maximum(hid, 0.0).astype(bf16)
    ff = _matmul_nt(hid, wff2_ref[...]) + bff2_ref[...]
    x2 = _layernorm(x1 + ff.astype(bf16), g2_ref[...], beta2_ref[...])

    # --- emit only the [CLS] row of each sequence ----------------------------
    o_ref[...] = x2.reshape(TB, L, D)[:, 0:1, :].astype(o_ref.dtype)


def bert_encoder_cls(p, ids, *, n_heads):
    """Fused single-layer encoder over a stacked batch; returns (N, D) [CLS]."""
    # TODO(synk): single encoder layer assumed (same as the previous version);
    # a deeper bert_model would loop this kernel with a full (N, L, D) output
    # for all but the last layer.
    N, L = ids.shape
    D = p["emb"].shape[1]
    TB = _pick_block_seqs(N, L)
    vmem_limit, single_buffer_weights = _tpu_config()

    # TODO(synk): embedding row gather stays in plain JAX.
    x = p["emb"][ids]                                   # (N, L, D) bf16
    pos = p["pos"][:L]                                   # (L, D)    bf16

    def rep(shape):
        # constant-index (VMEM-resident) block; single-buffered on v7x.
        if single_buffer_weights:
            return pl.BlockSpec(shape, lambda *_: (0,) * len(shape),
                                pipeline_mode=pl.Buffered(1))
        return pl.BlockSpec(shape, lambda *_: (0,) * len(shape))

    cls = pl.pallas_call(
        functools.partial(_encoder_layer_kernel, n_heads=n_heads),
        grid=(N // TB,),
        in_specs=[
            pl.BlockSpec((TB, L, D), lambda b: (b, 0, 0)),         # activations
            rep((L, D)),                                           # pos
            rep(p["wqkv"].shape), rep((1, p["bqkv"].shape[0])),    # QKV
            rep(p["wo"].shape),   rep((1, D)),                     # out proj
            rep((1, D)), rep((1, D)),                              # ln1 g/b
            rep(p["w_ff1"].shape), rep((1, p["b_ff1"].shape[0])),  # ffn1
            rep(p["w_ff2"].shape), rep((1, D)),                    # ffn2
            rep((1, D)), rep((1, D)),                              # ln2 g/b
        ],
        out_specs=pl.BlockSpec((TB, 1, D), lambda b: (b, 0, 0)),   # CLS only
        out_shape=jax.ShapeDtypeStruct((N, 1, D), jnp.bfloat16),
        scratch_shapes=[pltpu.VMEM((TB, L, D), jnp.bfloat16)],     # attn slab
        compiler_params=pltpu.CompilerParams(
            dimension_semantics=("parallel",),   # shard seq-blocks across TCs
            vmem_limit_bytes=vmem_limit,
        ),
    )(x, pos,
      p["wqkv"], p["bqkv"].reshape(1, -1),
      p["wo"], p["bo"].reshape(1, -1),
      p["ln1_g"].reshape(1, -1), p["ln1_b"].reshape(1, -1),
      p["w_ff1"], p["b_ff1"].reshape(1, -1),
      p["w_ff2"], p["b_ff2"].reshape(1, -1),
      p["ln2_g"].reshape(1, -1), p["ln2_b"].reshape(1, -1))
    return cls[:, 0, :]                                  # (N, D) bf16


# ---------------------------------------------------------------------------
# classification head: cat -> linear1 -> relu -> linear2 fused in one kernel
# ---------------------------------------------------------------------------
def _head_kernel(h1_ref, h2_ref, w1a_ref, w1b_ref, b1_ref, w2_ref, b2_ref, o_ref):
    # torch.cat((s1, s2), 1) @ W1^T  ==  s1 @ W1[:, :D]^T + s2 @ W1[:, D:]^T
    h = (_matmul_nt(h1_ref[...], w1a_ref[...])
         + _matmul_nt(h2_ref[...], w1b_ref[...])
         + b1_ref[...])
    h = jnp.maximum(h, 0.0).astype(jnp.bfloat16)         # ReLU
    o_ref[...] = (_matmul_nt(h, w2_ref[...]) + b2_ref[...]).astype(o_ref.dtype)


def classification_head(h1, h2, w1a, w1b, b1, w2, b2):
    # TODO(synk): tiny matmuls; could be fused/left to XLA (low priority).
    B, D = h1.shape
    Hh = w1a.shape[0]
    C = w2.shape[0]
    vmem_limit, _ = _tpu_config()
    fs = lambda shape: pl.BlockSpec(shape, lambda i: (0,) * len(shape))
    return pl.pallas_call(
        _head_kernel,
        grid=(1,),
        in_specs=[fs((B, D)), fs((B, D)), fs((Hh, D)), fs((Hh, D)),
                  fs((1, Hh)), fs((C, Hh)), fs((1, C))],
        out_specs=fs((B, C)),
        out_shape=jax.ShapeDtypeStruct((B, C), jnp.float32),
        compiler_params=pltpu.CompilerParams(
            dimension_semantics=("arbitrary",),
            vmem_limit_bytes=vmem_limit,
        ),
    )(h1, h2, w1a, w1b, b1.reshape(1, Hh), w2, b2.reshape(1, C))


# ---------------------------------------------------------------------------
# TwoSentencesModel.forward
# ---------------------------------------------------------------------------
@functools.partial(jax.jit, static_argnames=("n_heads",))
def two_sentences_forward(params, s, *, n_heads):
    # s: (2, B, L) token ids — run both sentences as ONE batch of 2B sequences.
    B, L = s.shape[1], s.shape[2]
    ids = s.reshape(2 * B, L)
    cls = bert_encoder_cls(params["bert"], ids, n_heads=n_heads)  # (2B, D) bf16
    h1, h2 = cls[:B], cls[B:]
    return classification_head(h1, h2, params["w1a"], params["w1b"],
                               params["b1"], params["w2"], params["b2"])


# ---------------------------------------------------------------------------
# deterministic parameter init (weights bf16, biases / LN params f32)
# ---------------------------------------------------------------------------
def init_params(key, vocab, max_len, d_model, d_ff, n_hidden, n_classes):
    ks = iter(jax.random.split(key, 16))

    def w(shape, s=0.05):
        return (s * jax.random.normal(next(ks), shape)).astype(jnp.bfloat16)

    zeros = lambda n: jnp.zeros((n,), jnp.float32)
    bert = dict(
        emb=w((vocab, d_model), 0.1),
        pos=w((max_len, d_model), 0.1),
        wqkv=w((3 * d_model, d_model)), bqkv=zeros(3 * d_model),
        wo=w((d_model, d_model)),       bo=zeros(d_model),
        ln1_g=jnp.ones((d_model,), jnp.float32), ln1_b=zeros(d_model),
        w_ff1=w((d_ff, d_model)), b_ff1=zeros(d_ff),
        w_ff2=w((d_model, d_ff)), b_ff2=zeros(d_model),
        ln2_g=jnp.ones((d_model,), jnp.float32), ln2_b=zeros(d_model),
    )
    # linear1: in_features = 2 * d_model; split once at init (no per-call slices)
    w1 = w((n_hidden, 2 * d_model))
    return dict(
        bert=bert,
        w1a=w1[:, :d_model], w1b=w1[:, d_model:], b1=zeros(n_hidden),
        w2=w((n_classes, n_hidden)), b2=zeros(n_classes),
    )


if __name__ == "__main__":
    B, L = 2, 8                       # batch, seq length
    VOCAB, MAXLEN = 50, 16
    D, HEADS, FF = 32, 4, 64
    N_HIDDEN, N_CLASSES = 64, 3

    key = jax.random.PRNGKey(0)
    pkey, dkey = jax.random.split(key)
    params = init_params(pkey, VOCAB, MAXLEN, D, FF, N_HIDDEN, N_CLASSES)

    # s = pair of tokenized sentences: shape (2, B, L) int32
    s = jax.random.randint(dkey, (2, B, L), 0, VOCAB, dtype=jnp.int32)

    out = two_sentences_forward(params, s, n_heads=HEADS)   # (B, N_CLASSES)
    out = jax.block_until_ready(out)
    assert out.shape == (B, N_CLASSES) and out.dtype == jnp.float32
    assert bool(jnp.all(jnp.isfinite(out)))
    print("KERNEL_OK")
</pallas_src>

<mosaic_0001>
module attributes {stable_mosaic.version = 11 : i64} {
  func.func @_encoder_layer_kernel(%arg0: i32, %arg1: memref<2x8x32xbf16, #tpu.memory_space<vmem>>, %arg2: memref<8x32xbf16, #tpu.memory_space<vmem>>, %arg3: memref<96x32xbf16, #tpu.memory_space<vmem>>, %arg4: memref<1x96xf32, #tpu.memory_space<vmem>>, %arg5: memref<32x32xbf16, #tpu.memory_space<vmem>>, %arg6: memref<1x32xf32, #tpu.memory_space<vmem>>, %arg7: memref<1x32xf32, #tpu.memory_space<vmem>>, %arg8: memref<1x32xf32, #tpu.memory_space<vmem>>, %arg9: memref<64x32xbf16, #tpu.memory_space<vmem>>, %arg10: memref<1x64xf32, #tpu.memory_space<vmem>>, %arg11: memref<32x64xbf16, #tpu.memory_space<vmem>>, %arg12: memref<1x32xf32, #tpu.memory_space<vmem>>, %arg13: memref<1x32xf32, #tpu.memory_space<vmem>>, %arg14: memref<1x32xf32, #tpu.memory_space<vmem>>, %arg15: memref<2x1x32xbf16, #tpu.memory_space<vmem>>, %arg16: memref<2x8x32xbf16, #tpu.memory_space<vmem>>) attributes {dimension_semantics = [#tpu.dimension_semantics<parallel>], iteration_bounds = array<i64: 2>, scalar_prefetch = 0 : i64, scratch_operands = 1 : i64, tpu.core_type = #tpu.core_type<tc>, window_params = [{transform_indices = @transform_0, window_bounds = array<i64: 2, 8, 32>}, {pipeline_mode = #tpu.pipeline_mode<synchronous>, transform_indices = @transform_1, window_bounds = array<i64: 8, 32>}, {pipeline_mode = #tpu.pipeline_mode<synchronous>, transform_indices = @transform_2, window_bounds = array<i64: 96, 32>}, {pipeline_mode = #tpu.pipeline_mode<synchronous>, transform_indices = @transform_3, window_bounds = array<i64: 1, 96>}, {pipeline_mode = #tpu.pipeline_mode<synchronous>, transform_indices = @transform_4, window_bounds = array<i64: 32, 32>}, {pipeline_mode = #tpu.pipeline_mode<synchronous>, transform_indices = @transform_5, window_bounds = array<i64: 1, 32>}, {pipeline_mode = #tpu.pipeline_mode<synchronous>, transform_indices = @transform_6, window_bounds = array<i64: 1, 32>}, {pipeline_mode = #tpu.pipeline_mode<synchronous>, transform_indices = @transform_7, window_bounds = array<i64: 1, 32>}, {pipeline_mode = #tpu.pipeline_mode<synchronous>, transform_indices = @transform_8, window_bounds = array<i64: 64, 32>}, {pipeline_mode = #tpu.pipeline_mode<synchronous>, transform_indices = @transform_9, window_bounds = array<i64: 1, 64>}, {pipeline_mode = #tpu.pipeline_mode<synchronous>, transform_indices = @transform_10, window_bounds = array<i64: 32, 64>}, {pipeline_mode = #tpu.pipeline_mode<synchronous>, transform_indices = @transform_11, window_bounds = array<i64: 1, 32>}, {pipeline_mode = #tpu.pipeline_mode<synchronous>, transform_indices = @transform_12, window_bounds = array<i64: 1, 32>}, {pipeline_mode = #tpu.pipeline_mode<synchronous>, transform_indices = @transform_13, window_bounds = array<i64: 1, 32>}, {transform_indices = @transform_14, window_bounds = array<i64: 2, 1, 32>}]} {
    %c0 = arith.constant 0 : index
    %c0_0 = arith.constant 0 : index
    %c0_1 = arith.constant 0 : index
    %0 = vector.load %arg1[%c0, %c0_0, %c0_1] : memref<2x8x32xbf16, #tpu.memory_space<vmem>>, vector<2x8x32xbf16>
    %c0_2 = arith.constant 0 : index
    %c0_3 = arith.constant 0 : index
    %1 = vector.load %arg2[%c0_2, %c0_3] : memref<8x32xbf16, #tpu.memory_space<vmem>>, vector<8x32xbf16>
    %2 = vector.shape_cast %1 : vector<8x32xbf16> to vector<1x8x32xbf16>
    %3 = vector.broadcast %2 : vector<1x8x32xbf16> to vector<2x8x32xbf16>
    %4 = arith.addf %0, %3 : vector<2x8x32xbf16>
    %5 = vector.shape_cast %4 : vector<2x8x32xbf16> to vector<16x32xbf16>
    %c0_4 = arith.constant 0 : index
    %c0_5 = arith.constant 0 : index
    %6 = vector.load %arg3[%c0_4, %c0_5] : memref<96x32xbf16, #tpu.memory_space<vmem>>, vector<96x32xbf16>
    %cst = arith.constant dense<0.000000e+00> : vector<16x96xf32>
    %7 = tpu.matmul %5, %6, %cst {dimension_numbers = #tpu.dot_dimension_numbers<[1], [1], [0], [0], [0, 0, 1, 0], [], []>} : vector<16x32xbf16>, vector<96x32xbf16>, vector<16x96xf32> -> vector<16x96xf32>
    %c0_6 = arith.constant 0 : index
    %c0_7 = arith.constant 0 : index
    %8 = vector.load %arg4[%c0_6, %c0_7] : memref<1x96xf32, #tpu.memory_space<vmem>>, vector<1x96xf32>
    %9 = vector.broadcast %8 : vector<1x96xf32> to vector<16x96xf32>
    %10 = arith.addf %7, %9 : vector<16x96xf32>
    %11 = vector.extract_strided_slice %10 {offsets = [0, 0], sizes = [16, 32], strides = [1, 1]} : vector<16x96xf32> to vector<16x32xf32>
    %cst_8 = arith.constant 0.353553385 : f32
    %12 = vector.broadcast %cst_8 : f32 to vector<16x32xf32>
    %13 = arith.mulf %11, %12 : vector<16x32xf32>
    %14 = vector.extract_strided_slice %10 {offsets = [0, 32], sizes = [16, 32], strides = [1, 1]} : vector<16x96xf32> to vector<16x32xf32>
    %15 = vector.extract_strided_slice %10 {offsets = [0, 64], sizes = [16, 32], strides = [1, 1]} : vector<16x96xf32> to vector<16x32xf32>
    %16 = vector.shape_cast %13 : vector<16x32xf32> to vector<2x8x32xf32>
    %17 = vector.shape_cast %14 : vector<16x32xf32> to vector<2x8x32xf32>
    %18 = vector.shape_cast %15 : vector<16x32xf32> to vector<2x8x32xf32>
    %19 = vector.extract_strided_slice %16 {offsets = [0, 0, 0], sizes = [2, 8, 8], strides = [1, 1, 1]} : vector<2x8x32xf32> to vector<2x8x8xf32>
    %20 = arith.truncf %19 : vector<2x8x8xf32> to vector<2x8x8xbf16>
    %21 = vector.extract_strided_slice %17 {offsets = [0, 0, 0], sizes = [2, 8, 8], strides = [1, 1, 1]} : vector<2x8x32xf32> to vector<2x8x8xf32>
    %22 = arith.truncf %21 : vector<2x8x8xf32> to vector<2x8x8xbf16>
    %23 = vector.extract_strided_slice %18 {offsets = [0, 0, 0], sizes = [2, 8, 8], strides = [1, 1, 1]} : vector<2x8x32xf32> to vector<2x8x8xf32>
    %24 = arith.truncf %23 : vector<2x8x8xf32> to vector<2x8x8xbf16>
    "tpu.trace_start"() <{level = 10 : i32, message = "bld,bmd->blm"}> : () -> ()
    %cst_9 = arith.constant dense<0.000000e+00> : vector<2x8x8xf32>
    %25 = tpu.matmul %20, %22, %cst_9 {dimension_numbers = #tpu.dot_dimension_numbers<[2], [2], [1], [1], [0, 0, 0, 1, 1, 1], [0], [0]>} : vector<2x8x8xbf16>, vector<2x8x8xbf16>, vector<2x8x8xf32> -> vector<2x8x8xf32>
    "tpu.trace_stop"() : () -> ()
    %cst_10 = arith.constant dense<0xFF800000> : vector<2x8xf32>
    %26 = vector.multi_reduction <maximumf>, %25, %cst_10 [2] : vector<2x8x8xf32> to vector<2x8xf32>
    %27 = vector.shape_cast %26 : vector<2x8xf32> to vector<2x8x1xf32>
    %28 = vector.broadcast %27 : vector<2x8x1xf32> to vector<2x8x8xf32>
    %29 = arith.subf %25, %28 : vector<2x8x8xf32>
    %30 = math.exp %29 : vector<2x8x8xf32>
    %cst_11 = arith.constant dense<0.000000e+00> : vector<2x8xf32>
    %31 = vector.multi_reduction <add>, %30, %cst_11 [2] : vector<2x8x8xf32> to vector<2x8xf32>
    %32 = vector.shape_cast %31 : vector<2x8xf32> to vector<2x8x1xf32>
    %33 = tpu.reciprocal %32 {approx = true} : vector<2x8x1xf32> -> vector<2x8x1xf32>
    %34 = vector.broadcast %33 : vector<2x8x1xf32> to vector<2x8x8xf32>
    %35 = arith.mulf %30, %34 : vector<2x8x8xf32>
    %36 = arith.truncf %35 : vector<2x8x8xf32> to vector<2x8x8xbf16>
    "tpu.trace_start"() <{level = 10 : i32, message = "blm,bmd->bld"}> : () -> ()
    %cst_12 = arith.constant dense<0.000000e+00> : vector<2x8x8xf32>
    %37 = tpu.matmul %36, %24, %cst_12 {dimension_numbers = #tpu.dot_dimension_numbers<[2], [1], [1], [2], [0, 0, 0, 1, 1, 2], [0], [0]>} : vector<2x8x8xbf16>, vector<2x8x8xbf16>, vector<2x8x8xf32> -> vector<2x8x8xf32>
    "tpu.trace_stop"() : () -> ()
    %38 = arith.truncf %37 : vector<2x8x8xf32> to vector<2x8x8xbf16>
    %c0_13 = arith.constant 0 : index
    %c0_14 = arith.constant 0 : index
    %c0_15 = arith.constant 0 : index
    %39 = vector.load %arg16[%c0_13, %c0_14, %c0_15] : memref<2x8x32xbf16, #tpu.memory_space<vmem>>, vector<2x8x8xbf16>
    tpu.vector_store %arg16[%c0_13, %c0_14, %c0_15], %38 {strides = array<i32>} : memref<2x8x32xbf16, #tpu.memory_space<vmem>>, vector<2x8x8xbf16>,
    %40 = vector.extract_strided_slice %16 {offsets = [0, 0, 8], sizes = [2, 8, 8], strides = [1, 1, 1]} : vector<2x8x32xf32> to vector<2x8x8xf32>
    %41 = arith.truncf %40 : vector<2x8x8xf32> to vector<2x8x8xbf16>
    %42 = vector.extract_strided_slice %17 {offsets = [0, 0, 8], sizes = [2, 8, 8], strides = [1, 1, 1]} : vector<2x8x32xf32> to vector<2x8x8xf32>
    %43 = arith.truncf %42 : vector<2x8x8xf32> to vector<2x8x8xbf16>
    %44 = vector.extract_strided_slice %18 {offsets = [0, 0, 8], sizes = [2, 8, 8], strides = [1, 1, 1]} : vector<2x8x32xf32> to vector<2x8x8xf32>
    %45 = arith.truncf %44 : vector<2x8x8xf32> to vector<2x8x8xbf16>
    "tpu.trace_start"() <{level = 10 : i32, message = "bld,bmd->blm"}> : () -> ()
    %cst_16 = arith.constant dense<0.000000e+00> : vector<2x8x8xf32>
    %46 = tpu.matmul %41, %43, %cst_16 {dimension_numbers = #tpu.dot_dimension_numbers<[2], [2], [1], [1], [0, 0, 0, 1, 1, 1], [0], [0]>} : vector<2x8x8xbf16>, vector<2x8x8xbf16>, vector<2x8x8xf32> -> vector<2x8x8xf32>
    "tpu.trace_stop"() : () -> ()
    %cst_17 = arith.constant dense<0xFF800000> : vector<2x8xf32>
    %47 = vector.multi_reduction <maximumf>, %46, %cst_17 [2] : vector<2x8x8xf32> to vector<2x8xf32>
    %48 = vector.shape_cast %47 : vector<2x8xf32> to vector<2x8x1xf32>
    %49 = vector.broadcast %48 : vector<2x8x1xf32> to vector<2x8x8xf32>
    %50 = arith.subf %46, %49 : vector<2x8x8xf32>
    %51 = math.exp %50 : vector<2x8x8xf32>
    %cst_18 = arith.constant dense<0.000000e+00> : vector<2x8xf32>
    %52 = vector.multi_reduction <add>, %51, %cst_18 [2] : vector<2x8x8xf32> to vector<2x8xf32>
    %53 = vector.shape_cast %52 : vector<2x8xf32> to vector<2x8x1xf32>
    %54 = tpu.reciprocal %53 {approx = true} : vector<2x8x1xf32> -> vector<2x8x1xf32>
    %55 = vector.broadcast %54 : vector<2x8x1xf32> to vector<2x8x8xf32>
    %56 = arith.mulf %51, %55 : vector<2x8x8xf32>
    %57 = arith.truncf %56 : vector<2x8x8xf32> to vector<2x8x8xbf16>
    "tpu.trace_start"() <{level = 10 : i32, message = "blm,bmd->bld"}> : () -> ()
    %cst_19 = arith.constant dense<0.000000e+00> : vector<2x8x8xf32>
    %58 = tpu.matmul %57, %45, %cst_19 {dimension_numbers = #tpu.dot_dimension_numbers<[2], [1], [1], [2], [0, 0, 0, 1, 1, 2], [0], [0]>} : vector<2x8x8xbf16>, vector<2x8x8xbf16>, vector<2x8x8xf32> -> vector<2x8x8xf32>
    "tpu.trace_stop"() : () -> ()
    %59 = arith.truncf %58 : vector<2x8x8xf32> to vector<2x8x8xbf16>
    %c0_20 = arith.constant 0 : index
    %c0_21 = arith.constant 0 : index
    %c8 = arith.constant 8 : index
    %60 = vector.load %arg16[%c0_20, %c0_21, %c8] : memref<2x8x32xbf16, #tpu.memory_space<vmem>>, vector<2x8x8xbf16>
    tpu.vector_store %arg16[%c0_20, %c0_21, %c8], %59 {strides = array<i32>} : memref<2x8x32xbf16, #tpu.memory_space<vmem>>, vector<2x8x8xbf16>,
    %61 = vector.extract_strided_slice %16 {offsets = [0, 0, 16], sizes = [2, 8, 8], strides = [1, 1, 1]} : vector<2x8x32xf32> to vector<2x8x8xf32>
    %62 = arith.truncf %61 : vector<2x8x8xf32> to vector<2x8x8xbf16>
    %63 = vector.extract_strided_slice %17 {offsets = [0, 0, 16], sizes = [2, 8, 8], strides = [1, 1, 1]} : vector<2x8x32xf32> to vector<2x8x8xf32>
    %64 = arith.truncf %63 : vector<2x8x8xf32> to vector<2x8x8xbf16>
    %65 = vector.extract_strided_slice %18 {offsets = [0, 0, 16], sizes = [2, 8, 8], strides = [1, 1, 1]} : vector<2x8x32xf32> to vector<2x8x8xf32>
    %66 = arith.truncf %65 : vector<2x8x8xf32> to vector<2x8x8xbf16>
    "tpu.trace_start"() <{level = 10 : i32, message = "bld,bmd->blm"}> : () -> ()
    %cst_22 = arith.constant dense<0.000000e+00> : vector<2x8x8xf32>
    %67 = tpu.matmul %62, %64, %cst_22 {dimension_numbers = #tpu.dot_dimension_numbers<[2], [2], [1], [1], [0, 0, 0, 1, 1, 1], [0], [0]>} : vector<2x8x8xbf16>, vector<2x8x8xbf16>, vector<2x8x8xf32> -> vector<2x8x8xf32>
    "tpu.trace_stop"() : () -> ()
    %cst_23 = arith.constant dense<0xFF800000> : vector<2x8xf32>
    %68 = vector.multi_reduction <maximumf>, %67, %cst_23 [2] : vector<2x8x8xf32> to vector<2x8xf32>
    %69 = vector.shape_cast %68 : vector<2x8xf32> to vector<2x8x1xf32>
    %70 = vector.broadcast %69 : vector<2x8x1xf32> to vector<2x8x8xf32>
    %71 = arith.subf %67, %70 : vector<2x8x8xf32>
    %72 = math.exp %71 : vector<2x8x8xf32>
    %cst_24 = arith.constant dense<0.000000e+00> : vector<2x8xf32>
    %73 = vector.multi_reduction <add>, %72, %cst_24 [2] : vector<2x8x8xf32> to vector<2x8xf32>
    %74 = vector.shape_cast %73 : vector<2x8xf32> to vector<2x8x1xf32>
    %75 = tpu.reciprocal %74 {approx = true} : vector<2x8x1xf32> -> vector<2x8x1xf32>
    %76 = vector.broadcast %75 : vector<2x8x1xf32> to vector<2x8x8xf32>
    %77 = arith.mulf %72, %76 : vector<2x8x8xf32>
    %78 = arith.truncf %77 : vector<2x8x8xf32> to vector<2x8x8xbf16>
    "tpu.trace_start"() <{level = 10 : i32, message = "blm,bmd->bld"}> : () -> ()
    %cst_25 = arith.constant dense<0.000000e+00> : vector<2x8x8xf32>
    %79 = tpu.matmul %78, %66, %cst_25 {dimension_numbers = #tpu.dot_dimension_numbers<[2], [1], [1], [2], [0, 0, 0, 1, 1, 2], [0], [0]>} : vector<2x8x8xbf16>, vector<2x8x8xbf16>, vector<2x8x8xf32> -> vector<2x8x8xf32>
    "tpu.trace_stop"() : () -> ()
    %80 = arith.truncf %79 : vector<2x8x8xf32> to vector<2x8x8xbf16>
    %c0_26 = arith.constant 0 : index
    %c0_27 = arith.constant 0 : index
    %c16 = arith.constant 16 : index
    %81 = vector.load %arg16[%c0_26, %c0_27, %c16] : memref<2x8x32xbf16, #tpu.memory_space<vmem>>, vector<2x8x8xbf16>
    tpu.vector_store %arg16[%c0_26, %c0_27, %c16], %80 {strides = array<i32>} : memref<2x8x32xbf16, #tpu.memory_space<vmem>>, vector<2x8x8xbf16>,
    %82 = vector.extract_strided_slice %16 {offsets = [0, 0, 24], sizes = [2, 8, 8], strides = [1, 1, 1]} : vector<2x8x32xf32> to vector<2x8x8xf32>
    %83 = arith.truncf %82 : vector<2x8x8xf32> to vector<2x8x8xbf16>
    %84 = vector.extract_strided_slice %17 {offsets = [0, 0, 24], sizes = [2, 8, 8], strides = [1, 1, 1]} : vector<2x8x32xf32> to vector<2x8x8xf32>
    %85 = arith.truncf %84 : vector<2x8x8xf32> to vector<2x8x8xbf16>
    %86 = vector.extract_strided_slice %18 {offsets = [0, 0, 24], sizes = [2, 8, 8], strides = [1, 1, 1]} : vector<2x8x32xf32> to vector<2x8x8xf32>
    %87 = arith.truncf %86 : vector<2x8x8xf32> to vector<2x8x8xbf16>
    "tpu.trace_start"() <{level = 10 : i32, message = "bld,bmd->blm"}> : () -> ()
    %cst_28 = arith.constant dense<0.000000e+00> : vector<2x8x8xf32>
    %88 = tpu.matmul %83, %85, %cst_28 {dimension_numbers = #tpu.dot_dimension_numbers<[2], [2], [1], [1], [0, 0, 0, 1, 1, 1], [0], [0]>} : vector<2x8x8xbf16>, vector<2x8x8xbf16>, vector<2x8x8xf32> -> vector<2x8x8xf32>
    "tpu.trace_stop"() : () -> ()
    %cst_29 = arith.constant dense<0xFF800000> : vector<2x8xf32>
    %89 = vector.multi_reduction <maximumf>, %88, %cst_29 [2] : vector<2x8x8xf32> to vector<2x8xf32>
    %90 = vector.shape_cast %89 : vector<2x8xf32> to vector<2x8x1xf32>
    %91 = vector.broadcast %90 : vector<2x8x1xf32> to vector<2x8x8xf32>
    %92 = arith.subf %88, %91 : vector<2x8x8xf32>
    %93 = math.exp %92 : vector<2x8x8xf32>
    %cst_30 = arith.constant dense<0.000000e+00> : vector<2x8xf32>
    %94 = vector.multi_reduction <add>, %93, %cst_30 [2] : vector<2x8x8xf32> to vector<2x8xf32>
    %95 = vector.shape_cast %94 : vector<2x8xf32> to vector<2x8x1xf32>
    %96 = tpu.reciprocal %95 {approx = true} : vector<2x8x1xf32> -> vector<2x8x1xf32>
    %97 = vector.broadcast %96 : vector<2x8x1xf32> to vector<2x8x8xf32>
    %98 = arith.mulf %93, %97 : vector<2x8x8xf32>
    %99 = arith.truncf %98 : vector<2x8x8xf32> to vector<2x8x8xbf16>
    "tpu.trace_start"() <{level = 10 : i32, message = "blm,bmd->bld"}> : () -> ()
    %cst_31 = arith.constant dense<0.000000e+00> : vector<2x8x8xf32>
    %100 = tpu.matmul %99, %87, %cst_31 {dimension_numbers = #tpu.dot_dimension_numbers<[2], [1], [1], [2], [0, 0, 0, 1, 1, 2], [0], [0]>} : vector<2x8x8xbf16>, vector<2x8x8xbf16>, vector<2x8x8xf32> -> vector<2x8x8xf32>
    "tpu.trace_stop"() : () -> ()
    %101 = arith.truncf %100 : vector<2x8x8xf32> to vector<2x8x8xbf16>
    %c0_32 = arith.constant 0 : index
    %c0_33 = arith.constant 0 : index
    %c24 = arith.constant 24 : index
    %102 = vector.load %arg16[%c0_32, %c0_33, %c24] : memref<2x8x32xbf16, #tpu.memory_space<vmem>>, vector<2x8x8xbf16>
    tpu.vector_store %arg16[%c0_32, %c0_33, %c24], %101 {strides = array<i32>} : memref<2x8x32xbf16, #tpu.memory_space<vmem>>, vector<2x8x8xbf16>,
    %c0_34 = arith.constant 0 : index
    %c0_35 = arith.constant 0 : index
    %c0_36 = arith.constant 0 : index
    %103 = vector.load %arg16[%c0_34, %c0_35, %c0_36] : memref<2x8x32xbf16, #tpu.memory_space<vmem>>, vector<2x8x32xbf16>
    %104 = vector.shape_cast %103 : vector<2x8x32xbf16> to vector<16x32xbf16>
    %c0_37 = arith.constant 0 : index
    %c0_38 = arith.constant 0 : index
    %105 = vector.load %arg5[%c0_37, %c0_38] : memref<32x32xbf16, #tpu.memory_space<vmem>>, vector<32x32xbf16>
    %cst_39 = arith.constant dense<0.000000e+00> : vector<16x32xf32>
    %106 = tpu.matmul %104, %105, %cst_39 {dimension_numbers = #tpu.dot_dimension_numbers<[1], [1], [0], [0], [0, 0, 1, 0], [], []>} : vector<16x32xbf16>, vector<32x32xbf16>, vector<16x32xf32> -> vector<16x32xf32>
    %c0_40 = arith.constant 0 : index
    %c0_41 = arith.constant 0 : index
    %107 = vector.load %arg6[%c0_40, %c0_41] : memref<1x32xf32, #tpu.memory_space<vmem>>, vector<1x32xf32>
    %108 = vector.broadcast %107 : vector<1x32xf32> to vector<16x32xf32>
    %109 = arith.addf %106, %108 : vector<16x32xf32>
    %110 = arith.truncf %109 : vector<16x32xf32> to vector<16x32xbf16>
    %111 = arith.addf %5, %110 : vector<16x32xbf16>
    %c0_42 = arith.constant 0 : index
    %c0_43 = arith.constant 0 : index
    %112 = vector.load %arg7[%c0_42, %c0_43] : memref<1x32xf32, #tpu.memory_space<vmem>>, vector<1x32xf32>
    %c0_44 = arith.constant 0 : index
    %c0_45 = arith.constant 0 : index
    %113 = vector.load %arg8[%c0_44, %c0_45] : memref<1x32xf32, #tpu.memory_space<vmem>>, vector<1x32xf32>
    %114 = arith.extf %111 : vector<16x32xbf16> to vector<16x32xf32>
    %cst_46 = arith.constant dense<0.000000e+00> : vector<16xf32>
    %115 = vector.multi_reduction <add>, %114, %cst_46 [1] : vector<16x32xf32> to vector<16xf32>
    %116 = vector.shape_cast %115 : vector<16xf32> to vector<16x1xf32>
    %cst_47 = arith.constant 3.200000e+01 : f32
    %117 = vector.broadcast %cst_47 : f32 to vector<16x1xf32>
    %118 = arith.divf %116, %117 : vector<16x1xf32>
    %119 = vector.broadcast %118 : vector<16x1xf32> to vector<16x32xf32>
    %120 = arith.subf %114, %119 : vector<16x32xf32>
    %121 = arith.mulf %120, %120 : vector<16x32xf32>
    %cst_48 = arith.constant dense<0.000000e+00> : vector<16xf32>
    %122 = vector.multi_reduction <add>, %121, %cst_48 [1] : vector<16x32xf32> to vector<16xf32>
    %123 = vector.shape_cast %122 : vector<16xf32> to vector<16x1xf32>
    %cst_49 = arith.constant 3.200000e+01 : f32
    %124 = vector.broadcast %cst_49 : f32 to vector<16x1xf32>
    %125 = arith.divf %123, %124 : vector<16x1xf32>
    %cst_50 = arith.constant 9.99999974E-6 : f32
    %126 = vector.broadcast %cst_50 : f32 to vector<16x1xf32>
    %127 = arith.addf %125, %126 : vector<16x1xf32>
    %128 = math.rsqrt %127 : vector<16x1xf32>
    %129 = vector.broadcast %128 : vector<16x1xf32> to vector<16x32xf32>
    %130 = arith.mulf %120, %129 : vector<16x32xf32>
    %131 = vector.broadcast %112 : vector<1x32xf32> to vector<16x32xf32>
    %132 = arith.mulf %130, %131 : vector<16x32xf32>
    %133 = vector.broadcast %113 : vector<1x32xf32> to vector<16x32xf32>
    %134 = arith.addf %132, %133 : vector<16x32xf32>
    %135 = arith.truncf %134 : vector<16x32xf32> to vector<16x32xbf16>
    %c0_51 = arith.constant 0 : index
    %c0_52 = arith.constant 0 : index
    %136 = vector.load %arg9[%c0_51, %c0_52] : memref<64x32xbf16, #tpu.memory_space<vmem>>, vector<64x32xbf16>
    %cst_53 = arith.constant dense<0.000000e+00> : vector<16x64xf32>
    %137 = tpu.matmul %135, %136, %cst_53 {dimension_numbers = #tpu.dot_dimension_numbers<[1], [1], [0], [0], [0, 0, 1, 0], [], []>} : vector<16x32xbf16>, vector<64x32xbf16>, vector<16x64xf32> -> vector<16x64xf32>
    %c0_54 = arith.constant 0 : index
    %c0_55 = arith.constant 0 : index
    %138 = vector.load %arg10[%c0_54, %c0_55] : memref<1x64xf32, #tpu.memory_space<vmem>>, vector<1x64xf32>
    %139 = vector.broadcast %138 : vector<1x64xf32> to vector<16x64xf32>
    %140 = arith.addf %137, %139 : vector<16x64xf32>
    %cst_56 = arith.constant 0.000000e+00 : f32
    %141 = vector.broadcast %cst_56 : f32 to vector<16x64xf32>
    %142 = arith.maximumf %140, %141 : vector<16x64xf32>
    %143 = arith.truncf %142 : vector<16x64xf32> to vector<16x64xbf16>
    %c0_57 = arith.constant 0 : index
    %c0_58 = arith.constant 0 : index
    %144 = vector.load %arg11[%c0_57, %c0_58] : memref<32x64xbf16, #tpu.memory_space<vmem>>, vector<32x64xbf16>
    %cst_59 = arith.constant dense<0.000000e+00> : vector<16x32xf32>
    %145 = tpu.matmul %143, %144, %cst_59 {dimension_numbers = #tpu.dot_dimension_numbers<[1], [1], [0], [0], [0, 0, 1, 0], [], []>} : vector<16x64xbf16>, vector<32x64xbf16>, vector<16x32xf32> -> vector<16x32xf32>
    %c0_60 = arith.constant 0 : index
    %c0_61 = arith.constant 0 : index
    %146 = vector.load %arg12[%c0_60, %c0_61] : memref<1x32xf32, #tpu.memory_space<vmem>>, vector<1x32xf32>
    %147 = vector.broadcast %146 : vector<1x32xf32> to vector<16x32xf32>
    %148 = arith.addf %145, %147 : vector<16x32xf32>
    %149 = arith.truncf %148 : vector<16x32xf32> to vector<16x32xbf16>
    %150 = arith.addf %135, %149 : vector<16x32xbf16>
    %c0_62 = arith.constant 0 : index
    %c0_63 = arith.constant 0 : index
    %151 = vector.load %arg13[%c0_62, %c0_63] : memref<1x32xf32, #tpu.memory_space<vmem>>, vector<1x32xf32>
    %c0_64 = arith.constant 0 : index
    %c0_65 = arith.constant 0 : index
    %152 = vector.load %arg14[%c0_64, %c0_65] : memref<1x32xf32, #tpu.memory_space<vmem>>, vector<1x32xf32>
    %153 = arith.extf %150 : vector<16x32xbf16> to vector<16x32xf32>
    %cst_66 = arith.constant dense<0.000000e+00> : vector<16xf32>
    %154 = vector.multi_reduction <add>, %153, %cst_66 [1] : vector<16x32xf32> to vector<16xf32>
    %155 = vector.shape_cast %154 : vector<16xf32> to vector<16x1xf32>
    %cst_67 = arith.constant 3.200000e+01 : f32
    %156 = vector.broadcast %cst_67 : f32 to vector<16x1xf32>
    %157 = arith.divf %155, %156 : vector<16x1xf32>
    %158 = vector.broadcast %157 : vector<16x1xf32> to vector<16x32xf32>
    %159 = arith.subf %153, %158 : vector<16x32xf32>
    %160 = arith.mulf %159, %159 : vector<16x32xf32>
    %cst_68 = arith.constant dense<0.000000e+00> : vector<16xf32>
    %161 = vector.multi_reduction <add>, %160, %cst_68 [1] : vector<16x32xf32> to vector<16xf32>
    %162 = vector.shape_cast %161 : vector<16xf32> to vector<16x1xf32>
    %cst_69 = arith.constant 3.200000e+01 : f32
    %163 = vector.broadcast %cst_69 : f32 to vector<16x1xf32>
    %164 = arith.divf %162, %163 : vector<16x1xf32>
    %cst_70 = arith.constant 9.99999974E-6 : f32
    %165 = vector.broadcast %cst_70 : f32 to vector<16x1xf32>
    %166 = arith.addf %164, %165 : vector<16x1xf32>
    %167 = math.rsqrt %166 : vector<16x1xf32>
    %168 = vector.broadcast %167 : vector<16x1xf32> to vector<16x32xf32>
    %169 = arith.mulf %159, %168 : vector<16x32xf32>
    %170 = vector.broadcast %151 : vector<1x32xf32> to vector<16x32xf32>
    %171 = arith.mulf %169, %170 : vector<16x32xf32>
    %172 = vector.broadcast %152 : vector<1x32xf32> to vector<16x32xf32>
    %173 = arith.addf %171, %172 : vector<16x32xf32>
    %174 = arith.truncf %173 : vector<16x32xf32> to vector<16x32xbf16>
    %175 = vector.shape_cast %174 : vector<16x32xbf16> to vector<2x8x32xbf16>
    %176 = vector.extract_strided_slice %175 {offsets = [0, 0, 0], sizes = [2, 1, 32], strides = [1, 1, 1]} : vector<2x8x32xbf16> to vector<2x1x32xbf16>
    %c0_71 = arith.constant 0 : index
    %c0_72 = arith.constant 0 : index
    %c0_73 = arith.constant 0 : index
    %177 = vector.load %arg15[%c0_71, %c0_72, %c0_73] : memref<2x1x32xbf16, #tpu.memory_space<vmem>>, vector<2x1x32xbf16>
    tpu.vector_store %arg15[%c0_71, %c0_72, %c0_73], %176 {strides = array<i32>} : memref<2x1x32xbf16, #tpu.memory_space<vmem>>, vector<2x1x32xbf16>,
    return
  }
  func.func @transform_0(%arg0: i32) -> (i32, i32, i32) {
    %c0_i32 = arith.constant 0 : i32
    %c0_i32_0 = arith.constant 0 : i32
    %c0_i32_1 = arith.constant 0 : i32
    return %arg0, %c0_i32, %c0_i32_0 : i32, i32, i32
  }
  func.func @transform_1(%arg0: i32) -> (i32, i32) {
    %c0_i32 = arith.constant 0 : i32
    %c0_i32_0 = arith.constant 0 : i32
    %c0_i32_1 = arith.constant 0 : i32
    return %c0_i32, %c0_i32_0 : i32, i32
  }
  func.func @transform_2(%arg0: i32) -> (i32, i32) {
    %c0_i32 = arith.constant 0 : i32
    %c0_i32_0 = arith.constant 0 : i32
    %c0_i32_1 = arith.constant 0 : i32
    return %c0_i32, %c0_i32_0 : i32, i32
  }
  func.func @transform_3(%arg0: i32) -> (i32, i32) {
    %c0_i32 = arith.constant 0 : i32
    %c0_i32_0 = arith.constant 0 : i32
    %c0_i32_1 = arith.constant 0 : i32
    return %c0_i32, %c0_i32_0 : i32, i32
  }
  func.func @transform_4(%arg0: i32) -> (i32, i32) {
    %c0_i32 = arith.constant 0 : i32
    %c0_i32_0 = arith.constant 0 : i32
    %c0_i32_1 = arith.constant 0 : i32
    return %c0_i32, %c0_i32_0 : i32, i32
  }
  func.func @transform_5(%arg0: i32) -> (i32, i32) {
    %c0_i32 = arith.constant 0 : i32
    %c0_i32_0 = arith.constant 0 : i32
    %c0_i32_1 = arith.constant 0 : i32
    return %c0_i32, %c0_i32_0 : i32, i32
  }
  func.func @transform_6(%arg0: i32) -> (i32, i32) {
    %c0_i32 = arith.constant 0 : i32
    %c0_i32_0 = arith.constant 0 : i32
    %c0_i32_1 = arith.constant 0 : i32
    return %c0_i32, %c0_i32_0 : i32, i32
  }
  func.func @transform_7(%arg0: i32) -> (i32, i32) {
    %c0_i32 = arith.constant 0 : i32
    %c0_i32_0 = arith.constant 0 : i32
    %c0_i32_1 = arith.constant 0 : i32
    return %c0_i32, %c0_i32_0 : i32, i32
  }
  func.func @transform_8(%arg0: i32) -> (i32, i32) {
    %c0_i32 = arith.constant 0 : i32
    %c0_i32_0 = arith.constant 0 : i32
    %c0_i32_1 = arith.constant 0 : i32
    return %c0_i32, %c0_i32_0 : i32, i32
  }
  func.func @transform_9(%arg0: i32) -> (i32, i32) {
    %c0_i32 = arith.constant 0 : i32
    %c0_i32_0 = arith.constant 0 : i32
    %c0_i32_1 = arith.constant 0 : i32
    return %c0_i32, %c0_i32_0 : i32, i32
  }
  func.func @transform_10(%arg0: i32) -> (i32, i32) {
    %c0_i32 = arith.constant 0 : i32
    %c0_i32_0 = arith.constant 0 : i32
    %c0_i32_1 = arith.constant 0 : i32
    return %c0_i32, %c0_i32_0 : i32, i32
  }
  func.func @transform_11(%arg0: i32) -> (i32, i32) {
    %c0_i32 = arith.constant 0 : i32
    %c0_i32_0 = arith.constant 0 : i32
    %c0_i32_1 = arith.constant 0 : i32
    return %c0_i32, %c0_i32_0 : i32, i32
  }
  func.func @transform_12(%arg0: i32) -> (i32, i32) {
    %c0_i32 = arith.constant 0 : i32
    %c0_i32_0 = arith.constant 0 : i32
    %c0_i32_1 = arith.constant 0 : i32
    return %c0_i32, %c0_i32_0 : i32, i32
  }
  func.func @transform_13(%arg0: i32) -> (i32, i32) {
    %c0_i32 = arith.constant 0 : i32
    %c0_i32_0 = arith.constant 0 : i32
    %c0_i32_1 = arith.constant 0 : i32
    return %c0_i32, %c0_i32_0 : i32, i32
  }
  func.func @transform_14(%arg0: i32) -> (i32, i32, i32) {
    %c0_i32 = arith.constant 0 : i32
    %c0_i32_0 = arith.constant 0 : i32
    %c0_i32_1 = arith.constant 0 : i32
    return %arg0, %c0_i32, %c0_i32_0 : i32, i32, i32
  }
}

module attributes {stable_mosaic.version = 11 : i64} {
  func.func @_head_kernel(%arg0: i32, %arg1: memref<2x32xbf16, #tpu.memory_space<vmem>>, %arg2: memref<2x32xbf16, #tpu.memory_space<vmem>>, %arg3: memref<64x32xbf16, #tpu.memory_space<vmem>>, %arg4: memref<64x32xbf16, #tpu.memory_space<vmem>>, %arg5: memref<1x64xf32, #tpu.memory_space<vmem>>, %arg6: memref<3x64xbf16, #tpu.memory_space<vmem>>, %arg7: memref<1x3xf32, #tpu.memory_space<vmem>>, %arg8: memref<2x3xf32, #tpu.memory_space<vmem>>) attributes {dimension_semantics = [#tpu.dimension_semantics<arbitrary>], iteration_bounds = array<i64: 1>, scalar_prefetch = 0 : i64, scratch_operands = 0 : i64, tpu.core_type = #tpu.core_type<tc>, window_params = [{pipeline_mode = #tpu.pipeline_mode<synchronous>, transform_indices = @transform_0, window_bounds = array<i64: 2, 32>}, {pipeline_mode = #tpu.pipeline_mode<synchronous>, transform_indices = @transform_1, window_bounds = array<i64: 2, 32>}, {pipeline_mode = #tpu.pipeline_mode<synchronous>, transform_indices = @transform_2, window_bounds = array<i64: 64, 32>}, {pipeline_mode = #tpu.pipeline_mode<synchronous>, transform_indices = @transform_3, window_bounds = array<i64: 64, 32>}, {pipeline_mode = #tpu.pipeline_mode<synchronous>, transform_indices = @transform_4, window_bounds = array<i64: 1, 64>}, {pipeline_mode = #tpu.pipeline_mode<synchronous>, transform_indices = @transform_5, window_bounds = array<i64: 3, 64>}, {pipeline_mode = #tpu.pipeline_mode<synchronous>, transform_indices = @transform_6, window_bounds = array<i64: 1, 3>}, {pipeline_mode = #tpu.pipeline_mode<synchronous>, transform_indices = @transform_7, window_bounds = array<i64: 2, 3>}]} {
    %c0 = arith.constant 0 : index
    %c0_0 = arith.constant 0 : index
    %0 = vector.load %arg1[%c0, %c0_0] : memref<2x32xbf16, #tpu.memory_space<vmem>>, vector<2x32xbf16>
    %c0_1 = arith.constant 0 : index
    %c0_2 = arith.constant 0 : index
    %1 = vector.load %arg3[%c0_1, %c0_2] : memref<64x32xbf16, #tpu.memory_space<vmem>>, vector<64x32xbf16>
    %cst = arith.constant dense<0.000000e+00> : vector<2x64xf32>
    %2 = tpu.matmul %0, %1, %cst {dimension_numbers = #tpu.dot_dimension_numbers<[1], [1], [0], [0], [0, 0, 1, 0], [], []>} : vector<2x32xbf16>, vector<64x32xbf16>, vector<2x64xf32> -> vector<2x64xf32>
    %c0_3 = arith.constant 0 : index
    %c0_4 = arith.constant 0 : index
    %3 = vector.load %arg2[%c0_3, %c0_4] : memref<2x32xbf16, #tpu.memory_space<vmem>>, vector<2x32xbf16>
    %c0_5 = arith.constant 0 : index
    %c0_6 = arith.constant 0 : index
    %4 = vector.load %arg4[%c0_5, %c0_6] : memref<64x32xbf16, #tpu.memory_space<vmem>>, vector<64x32xbf16>
    %cst_7 = arith.constant dense<0.000000e+00> : vector<2x64xf32>
    %5 = tpu.matmul %3, %4, %cst_7 {dimension_numbers = #tpu.dot_dimension_numbers<[1], [1], [0], [0], [0, 0, 1, 0], [], []>} : vector<2x32xbf16>, vector<64x32xbf16>, vector<2x64xf32> -> vector<2x64xf32>
    %6 = arith.addf %2, %5 : vector<2x64xf32>
    %c0_8 = arith.constant 0 : index
    %c0_9 = arith.constant 0 : index
    %7 = vector.load %arg5[%c0_8, %c0_9] : memref<1x64xf32, #tpu.memory_space<vmem>>, vector<1x64xf32>
    %8 = vector.broadcast %7 : vector<1x64xf32> to vector<2x64xf32>
    %9 = arith.addf %6, %8 : vector<2x64xf32>
    %cst_10 = arith.constant 0.000000e+00 : f32
    %10 = vector.broadcast %cst_10 : f32 to vector<2x64xf32>
    %11 = arith.maximumf %9, %10 : vector<2x64xf32>
    %12 = arith.truncf %11 : vector<2x64xf32> to vector<2x64xbf16>
    %c0_11 = arith.constant 0 : index
    %c0_12 = arith.constant 0 : index
    %13 = vector.load %arg6[%c0_11, %c0_12] : memref<3x64xbf16, #tpu.memory_space<vmem>>, vector<3x64xbf16>
    %cst_13 = arith.constant dense<0.000000e+00> : vector<2x3xf32>
    %14 = tpu.matmul %12, %13, %cst_13 {dimension_numbers = #tpu.dot_dimension_numbers<[1], [1], [0], [0], [0, 0, 1, 0], [], []>} : vector<2x64xbf16>, vector<3x64xbf16>, vector<2x3xf32> -> vector<2x3xf32>
    %c0_14 = arith.constant 0 : index
    %c0_15 = arith.constant 0 : index
    %15 = vector.load %arg7[%c0_14, %c0_15] : memref<1x3xf32, #tpu.memory_space<vmem>>, vector<1x3xf32>
    %16 = vector.broadcast %15 : vector<1x3xf32> to vector<2x3xf32>
    %17 = arith.addf %14, %16 : vector<2x3xf32>
    %c0_16 = arith.constant 0 : index
    %c0_17 = arith.constant 0 : index
    %18 = vector.load %arg8[%c0_16, %c0_17] : memref<2x3xf32, #tpu.memory_space<vmem>>, vector<2x3xf32>
    tpu.vector_store %arg8[%c0_16, %c0_17], %17 {strides = array<i32>} : memref<2x3xf32, #tpu.memory_space<vmem>>, vector<2x3xf32>,
    return
  }
  func.func @transform_0(%arg0: i32) -> (i32, i32) {
    %c0_i32 = arith.constant 0 : i32
    %c0_i32_0 = arith.constant 0 : i32
    %c0_i32_1 = arith.constant 0 : i32
    return %c0_i32, %c0_i32_0 : i32, i32
  }
  func.func @transform_1(%arg0: i32) -> (i32, i32) {
    %c0_i32 = arith.constant 0 : i32
    %c0_i32_0 = arith.constant 0 : i32
    %c0_i32_1 = arith.constant 0 : i32
    return %c0_i32, %c0_i32_0 : i32, i32
  }
  func.func @transform_2(%arg0: i32) -> (i32, i32) {
    %c0_i32 = arith.constant 0 : i32
    %c0_i32_0 = arith.constant 0 : i32
    %c0_i32_1 = arith.constant 0 : i32
    return %c0_i32, %c0_i32_0 : i32, i32
  }
  func.func @transform_3(%arg0: i32) -> (i32, i32) {
    %c0_i32 = arith.constant 0 : i32
    %c0_i32_0 = arith.constant 0 : i32
    %c0_i32_1 = arith.constant 0 : i32
    return %c0_i32, %c0_i32_0 : i32, i32
  }
  func.func @transform_4(%arg0: i32) -> (i32, i32) {
    %c0_i32 = arith.constant 0 : i32
    %c0_i32_0 = arith.constant 0 : i32
    %c0_i32_1 = arith.constant 0 : i32
    return %c0_i32, %c0_i32_0 : i32, i32
  }
  func.func @transform_5(%arg0: i32) -> (i32, i32) {
    %c0_i32 = arith.constant 0 : i32
    %c0_i32_0 = arith.constant 0 : i32
    %c0_i32_1 = arith.constant 0 : i32
    return %c0_i32, %c0_i32_0 : i32, i32
  }
  func.func @transform_6(%arg0: i32) -> (i32, i32) {
    %c0_i32 = arith.constant 0 : i32
    %c0_i32_0 = arith.constant 0 : i32
    %c0_i32_1 = arith.constant 0 : i32
    return %c0_i32, %c0_i32_0 : i32, i32
  }
  func.func @transform_7(%arg0: i32) -> (i32, i32) {
    %c0_i32 = arith.constant 0 : i32
    %c0_i32_0 = arith.constant 0 : i32
    %c0_i32_1 = arith.constant 0 : i32
    return %c0_i32, %c0_i32_0 : i32, i32
  }
}

</mosaic_0001>

<bundles_post_ra>
// kernel: two_sentences_forward.3
= control target key start
LH: loop header
LB: loop body
LE: loop exit
PB: predicated region body
PF: predicated region fallthrough
CT: control target
= control target key end

     0   :  { %v366_v1 = vmov 0.0   ;;  %vm66_vm0 = vcmask 261120   ;;  %vm367_vm1 = vmmov 0   ;;  %s466_s0 = inlined_call_operand.vmem [shape: bf16[2,32], index: 0, kind: input, shape index: {}]   ;;  %s467_s1 = inlined_call_operand.vmem [shape: bf16[2,32], index: 1, kind: input, shape index: {}]   ;;  %s468_s2 = inlined_call_operand.vmem [shape: bf16[64,32], index: 2, kind: input, shape index: {}]   ;;  %s469_s3 = inlined_call_operand.vmem [shape: bf16[64,32], index: 3, kind: input, shape index: {}]   ;;  %s470_s4 = inlined_call_operand.vmem [shape: f32[1,64], index: 4, kind: input, shape index: {}]   ;;  %s471_s5 = inlined_call_operand.vmem [shape: bf16[3,64], index: 5, kind: input, shape index: {}]   ;;  %s472_s6 = inlined_call_operand.vmem [shape: f32[1,3], index: 6, kind: input, shape index: {}]   ;;  %s473_s7 = inlined_call_operand.hbm [shape: f32[2,3], index: 7, kind: output, shape index: {}]  }
   0x1   :  { %v336_v0 = vld [vmem:[%s469_s3 + $0x18] sm:$0xff]   ;;  %303 = vmatprep.subr.bf16.mxu0 %v366_v1  ;;  %315 = vmatprep.subr.bf16.mxu1 %v366_v1  ;;  %v338_v5 = vld [vmem:[%s469_s3 + $0x10] sm:$0xff]  }
   0x2   :  { %v337_v2 = vld [vmem:[%s468_s2 + $0x18] sm:$0xff]   ;;  %v80_v3 = vsel %vm66_vm0, %v336_v0, 0  ;;  %v339_v6 = vld [vmem:[%s468_s2 + $0x10] sm:$0xff]   ;;  %v77_v7 = vsel %vm66_vm0, %v338_v5, 0  ;;  %311 = vmatprep.mubr.msk.bf16.mxu0 %vm367_vm1, %v366_v1  ;;  %323 = vmatprep.mubr.msk.bf16.mxu1 %vm367_vm1, %v366_v1 }
   0x3   :  { %304 = vmatpush3.bf16.xpose.msra.mxu0 %v80_v3  ;;  %v155_v4 = vsel %vm66_vm0, %v337_v2, 0  ;;  %v152_v8 = vsel %vm66_vm0, %v339_v6, 0 }
   0x4   :  { %316 = vmatpush3.bf16.xpose.msra.mxu1 %v155_v4  ;;  %305 = vmatprep.subr.bf16.mxu0 %v366_v1 }
   0x5   :  { %317 = vmatprep.subr.bf16.mxu1 %v366_v1 }
   0x6   :  { %12 = vsyncpa [#allocation3], 0  ;;  %v340_v9 = vld [vmem:[%s469_s3 + $0x8] sm:$0xff]   ;;  %v342_v13 = vld [vmem:[%s469_s3] sm:$0xff]   ;;  %vm215_vm2 = vcmask 523264   ;;  %s368_s22 = smov [#allocation2]  }
   0x7   :  { %v341_v10 = vld [vmem:[%s468_s2 + $0x8] sm:$0xff]   ;;  %v74_v11 = vsel %vm66_vm0, %v340_v9, 0  ;;  %v343_v14 = vld [vmem:[%s468_s2] sm:$0xff]   ;;  %v71_v15 = vsel %vm66_vm0, %v342_v13, 0  ;;  %s270_s23 = sshll.u32 %s368_s22, 4  ;;  %vm262_vm3 = vcmask 17408   ;;  %s271_s23 = int_to_ptr.vmem [resolvable:$true] %s270_s23 }
   0x8   :  { %v149_v12 = vsel %vm66_vm0, %v341_v10, 0  ;;  %v146_v16 = vsel %vm66_vm0, %v343_v14, 0  ;;  %v37_v17 = vld [vmem:[%s467_s1] sm:$0x1]  ;;  %p349_p1 = scmp.lt.s32.totalorder %s271_s23, %s271_s23 }
   0x9   :  { %v28_v18 = vld [vmem:[%s466_s0] sm:$0x1] }
   0xa   :  { %v207_v19 = vld [vmem:[%s471_s5] sm:$0x3] }
   0xb   :  { %306 = vmatpush3.bf16.xpose.msra.mxu0 %v77_v7  ;;  %v220_v20 = vsel %vm215_vm2, %v207_v19, 0  ;;  %v288_v23 = vld [vmem:[%s470_s4] ss:$0 sm:$0xff]  ;;  %s344_s4 = scalar_lea.vmem %s271_s23, 32 }
   0xc   :  { %318 = vmatpush3.bf16.xpose.msra.mxu1 %v152_v8  ;;  %307 = vmatprep.subr.bf16.mxu0 %v366_v1  ;;  %v289_v34 = vld [vmem:[%s472_s6] ss:$0 sm:$0xff]  ;;  %p345_p0 = scmp.ne.s32.totalorder %s271_s23, %s344_s4  ;;  %p350_p2 = scmp.lt.s32.totalorder %s344_s4, %s344_s4 }
   0xd   :  { %319 = vmatprep.subr.bf16.mxu1 %v366_v1 }
   0xe   :  { %p351_p3 = por %p350_p2, %p349_p1 }
  0x10   :  { %p352_p4 = pnand %p351_p3, %p345_p0 }
  0x13   :  { %308 = vmatpush3.bf16.xpose.msra.mxu0 %v74_v11 }
  0x14   :  { %320 = vmatpush3.bf16.xpose.msra.mxu1 %v149_v12  ;;  %309 = vmatprep.subr.bf16.mxu0 %v366_v1 }
  0x15   :  { %321 = vmatprep.subr.bf16.mxu1 %v366_v1 }
  0x1b   :  { %310 = vmatpush3.bf16.xpose.msra.mxu0 %v71_v15 }
  0x1c   :  { %322 = vmatpush3.bf16.xpose.msra.mxu1 %v146_v16  ;;  %327 = vmatprep.subr.bf16.mxu0 %v366_v1 }
  0x22   :  { %312 = vmatmul.mubr.msk.bf16.vlgmr.msra.gmra.mxu0 %vm66_vm0, %v37_v17 }
  0x23   :  { %324 = vmatmul.mubr.msk.bf16.vlgmr.msra.gmra.mxu1 %vm66_vm0, %v28_v18  ;;  %329 = vmatprep.mubr.msk.bf16.mxu0 %vm367_vm1, %v366_v1 }
  0x24   :  { %328 = vmatpush3.bf16.xpose.msra.mxu0 %v220_v20 }
  0xe2   :  { %v116_v21 = vpop.f32.mrf.mxu0 }
  0xe3   :  { %v191_v22 = vpop.f32.mrf.mxu1 }
  0xe4   :  { %v192_v24 = vadd.f32 %v191_v22, %v116_v21  ;;  %v313_v25 = vpop.f32.mrf.mxu0 }
  0xe5   :  { %v325_v26 = vpop.f32.mrf.mxu1 }
  0xe6   :  { %v204_v27 = vadd.f32 %v288_v23, %v192_v24  ;;  %v119_v28 = vpop.f32.mrf.mxu0 }
  0xe7   :  { %v194_v29 = vpop.f32.mrf.mxu1 }
  0xe8   :  { %v205_v30 = vmax.f32 %v204_v27, 0.0  ;;  %v314_v31 = vpop.f32.mrf.mxu0 }
  0xe9   :  { %v326_v32 = vpop.f32.mrf.mxu1 }
  0xea   :  { %v206_v33 = vpack.c.bf16 %v205_v30, %v205_v30 }
  0xec   :  { %330 = vmatmul.mubr.msk.bf16.vlgmr.msra.gmra.mxu0 %vm215_vm2, %v206_v33 }
 0x1ac   :  { %v256_v35 = vpop.f32.mrf.mxu0 }
 0x1ad   :  { %v257_v36 = vadd.f32 %v289_v34, %v256_v35 }
 0x1ae   :  { %v331_v37 = vpop.f32.mrf.mxu0 }
 0x1af   :  { %263 = vst.msk [vmem:[#allocation2] sm:$0x3] %vm262_vm3, %v257_v36 }
 0x1b0   :  { %v259_v38 = vpop.f32.mrf.mxu0 }
 0x1b1   :  { %355 = shalt.err (!%p352_p4)
}
 0x1b2   :  { %273 = dma.vmem_to_hbm [thread:$0]  %s271_s23, 32, %s473_s7, [#allocation3]   ;;  %v332_v39 = vpop.f32.mrf.mxu0 }
 0x1b3   :  { %364 = dma.done.wait [#allocation3], 32  }
 0x1b4   :  { %365 = vsyncadd [#allocation3], 4294967264 }
 0x1b5   :  { %277 = vsyncpa [#allocation3], 1 }

// kernel: two_sentences_forward.2
= control target key start
LH: loop header
LB: loop body
LE: loop exit
PB: predicated region body
PF: predicated region fallthrough
CT: control target
= control target key end

     0   :  { %s2395_s29 = smov 0   ;;  %s2681_s0 = inlined_call_operand.vmem [shape: bf16[4,8,32], index: 0, kind: input, shape index: {}]   ;;  %s2682_s1 = inlined_call_operand.vmem [shape: bf16[8,32], index: 1, kind: input, shape index: {}]   ;;  %s2683_s2 = inlined_call_operand.vmem [shape: bf16[96,32], index: 2, kind: input, shape index: {}]   ;;  %s2684_s3 = inlined_call_operand.vmem [shape: f32[1,96], index: 3, kind: input, shape index: {}]   ;;  %s2685_s4 = inlined_call_operand.vmem [shape: bf16[32,32], index: 4, kind: input, shape index: {}]   ;;  %s2686_s5 = inlined_call_operand.vmem [shape: f32[1,32], index: 5, kind: input, shape index: {}]   ;;  %s2687_s6 = inlined_call_operand.vmem [shape: f32[1,32], index: 6, kind: input, shape index: {}]   ;;  %s2688_s7 = inlined_call_operand.vmem [shape: f32[1,32], index: 7, kind: input, shape index: {}]   ;;  %s2689_s8 = inlined_call_operand.vmem [shape: bf16[64,32], index: 8, kind: input, shape index: {}]   ;;  %s2690_s9 = inlined_call_operand.vmem [shape: f32[1,64], index: 9, kind: input, shape index: {}]   ;;  %s2691_s10 = inlined_call_operand.vmem [shape: bf16[32,64], index: 10, kind: input, shape index: {}]   ;;  %s2692_s11 = inlined_call_operand.vmem [shape: f32[1,32], index: 11, kind: input, shape index: {}]   ;;  %s2693_s12 = inlined_call_operand.vmem [shape: f32[1,32], index: 12, kind: input, shape index: {}]   ;;  %s2694_s13 = inlined_call_operand.vmem [shape: f32[1,32], index: 13, kind: input, shape index: {}]   ;;  %s2695_s14 = inlined_call_operand.vmem [shape: bf16[4,1,32], index: 14, kind: output, shape index: {}]  }
   0x1 LB: > { %s1953_s30 = sadd.s32 4294967295, %s2302_s29   ;;  %p1957_p0 = scmp.ge.s32.totalorder %s2302_s29, 1  ;;  %s2302_s29 = sphi %s2395_s29, %s24_s29  }
   0x2   : > { %p413_p1 = scmp.lt.s32.totalorder %s2302_s29, 3 }
   0x4   : > { %p414_p2 = pnand %p1957_p0, %p413_p1 }
   0x5   : > { %s1958_s23 = sshll.u32 (!%p414_p2), %s1953_s30, 1  ;;  %s2306_s21 = smov (!%p414_p2), 96  }
   0x6   : > { %417 = sbr.rel (%p414_p2) target bundleno = 4002 (0xfa2), region = 76  ;;  %p459_p3 = scmp.lt.s32.totalorder (!%p414_p2), %s1958_s23, 3 }
   0x7   : > { %s2307_s22 = smov (!%p414_p2), 64   ;;  %s2308_s24 = smov (!%p414_p2), 88  }
   0x8   : > { %s2309_s25 = smov (!%p414_p2), 120   ;;  %s2311_s27 = smov (!%p414_p2), 80  }
   0x9   : > { %s2312_s28 = smov (!%p414_p2), 112   ;;  %s2313_s30 = smov (!%p414_p2), 48  }
   0xa   : > { %s2314_s15 = smov (!%p414_p2), 72   ;;  %s2316_s17 = smov (!%p414_p2), 40  }
   0xb   : > { %v2241_v0 = vld [vmem:[%s2683_s2 + $0x28] sm:$0xff]   ;;  %v2304_v1 = vmov 0.0   ;;  %vm529_vm0 = vcmask 261120   ;;  %v2242_v3 = vld [vmem:[%s2683_s2 + $0x20] sm:$0xff]   ;;  %vm2305_vm1 = vmmov 0   ;;  %v2243_v5 = vld [vmem:[%s2683_s2 + $0x18] sm:$0xff]  }
   0xc   : > { %2077 = vmatprep.subr.bf16.mxu0 %v2304_v1  ;;  %2093 = vmatprep.subr.bf16.mxu1 %v2304_v1  ;;  %v549_v2 = vsel %vm529_vm0, %v2241_v0, 0  ;;  %v546_v4 = vsel %vm529_vm0, %v2242_v3, 0  ;;  %v543_v6 = vsel %vm529_vm0, %v2243_v5, 0  ;;  %v2244_v7 = vld [vmem:[%s2683_s2 + $0x10] sm:$0xff]   ;;  %v2245_v9 = vld [vmem:[%s2683_s2 + $0x8] sm:$0xff]   ;;  %s2697_s23 = smov (!%p459_p3, %s1958_s23), 3 }
   0xd   : > { %2078 = vmatpush3.bf16.xpose.msra.mxu0 %v549_v2  ;;  %2089 = vmatprep.mubr.msk.bf16.mxu0 %vm2305_vm1, %v2304_v1  ;;  %v540_v8 = vsel %vm529_vm0, %v2244_v7, 0  ;;  %v537_v10 = vsel %vm529_vm0, %v2245_v9, 0  ;;  %s1959_s26 = sshll.u32 %s2697_s23, 2  ;;  %v2246_v11 = vld [vmem:[%s2683_s2] sm:$0xff]   ;;  %vm601_vm2 = vcmask 64512   ;;  %vm726_vm3 = vcmask 1043456  }
   0xe   : > { %2079 = vmatprep.subr.bf16.mxu0 %v2304_v1  ;;  %2095 = vmatprep.mubr.msk.bf16.mxu1 %vm2305_vm1, %v2304_v1  ;;  %s462_s16 = scalar_lea.vmem %s2681_s0, %s1959_s26  ;;  %v472_v14 = vld [vmem:[%s2682_s1] sm:$0xf]  ;;  %v534_v15 = vsel %vm529_vm0, %v2246_v11, 0  ;;  %vm820_vm4 = vcmask 60416   ;;  %s2310_s26 = smov 56   ;;  %vm1059_vm5 = vcmask 126016  }
   0xf   : > { %v470_v12 = vld [vmem:[%s462_s16] sm:$0xf]  ;;  %v471_v13 = vld [vmem:[%s462_s16 + $0x4] sm:$0xf]  ;;  %s2315_s16 = smov 104   ;;  %s2317_s18 = smov 8  }
  0x10   : > { %v2447_v16 = vadd.bf16 %v472_v14, %v470_v12  ;;  %v2449_v17 = vadd.bf16 %v472_v14, %v471_v13  ;;  %v1961_v19 = vld [vmem:[%s2684_s3] ss:$0 sm:$0xff]  ;;  %s2318_s19 = smov 16   ;;  %vm1296_vm6 = vcmask 191616   ;;  %vm1533_vm7 = vcmask 257216  }
  0x11   : > { %vm1787_vm8 = vcmask 523264   ;;  %vm1894_vm9 = vcmask 253952   ;;  %vm1895_vm10 = vsmask.f32 256 }
  0x12   : > { %v1962_v18 = vcombine.low %v2447_v16, %v2449_v17  ;;  %vm1896_vm11 = vmand %vm1894_vm9, %vm1895_vm10 }
  0x15   : > { %2080 = vmatpush3.bf16.xpose.msra.mxu0 %v546_v4 }
  0x16   : > { %2081 = vmatprep.subr.bf16.mxu0 %v2304_v1 }
  0x1d   : > { %2082 = vmatpush3.bf16.xpose.msra.mxu0 %v543_v6 }
  0x1e   : > { %2083 = vmatprep.subr.bf16.mxu0 %v2304_v1 }
  0x25   : > { %2084 = vmatpush3.bf16.xpose.msra.mxu0 %v540_v8 }
  0x26   : > { %2085 = vmatprep.subr.bf16.mxu0 %v2304_v1 }
  0x2d   : > { %2086 = vmatpush3.bf16.xpose.msra.mxu0 %v537_v10 }
  0x2e   : > { %2087 = vmatprep.subr.bf16.mxu0 %v2304_v1 }
  0x35   : > { %2088 = vmatpush3.bf16.xpose.msra.mxu0 %v534_v15 }
  0x36   : > { %2129 = vmatprep.subr.bf16.mxu0 %v2304_v1 }
  0x3c   : > { %2090 = vmatmul.mubr.msk.bf16.vlgmr.msra.gmra.mxu0 %vm529_vm0, %v1962_v18 }
  0x3d   : > { %2131 = vmatprep.mubr.msk.bf16.mxu0 %vm2305_vm1, %v2304_v1 }
  0xfc   : > { %v585_v20 = vpop.f32.mrf.mxu0 }
  0xfd   : > { %v586_v21 = vadd.f32 %v1961_v19, %v585_v20 }
  0xfe   : > { %v2091_v22 = vpop.f32.mrf.mxu0 }
  0xff   : > { %v2460_v23 = vpack.c.bf16 %v586_v21, %v586_v21  ;;  %v592_v30 = vmul.f32 0.35355338, %v586_v21 }
 0x100   : > { %v588_v24 = vpop.f32.mrf.mxu0 }
 0x101   : > { %v589_v25 = vadd.f32 %v1961_v19, %v588_v24  ;;  %599 = vrot.lane.b32.xlu0 %v2460_v23, %s2306_s21  ;;  %v2468_v32 = vpack.c.bf16 %v592_v30, %v592_v30 }
 0x102   : > { %v2092_v26 = vpop.f32.mrf.mxu0 }
 0x103   : > { %v2463_v27 = vpack.c.bf16 %v589_v25, %v589_v25  ;;  %v593_v34 = vmul.f32 0.35355338, %v589_v25 }
 0x105   : > { %649 = vrot.lane.b32.xlu0 %v2463_v27, %s2306_s21  ;;  %v2476_v35 = vpack.c.bf16 %v593_v34, %v593_v34 }
 0x173   : > { %v600_v28 = vpop.permute.xlu0 %599 }
 0x174   : > { %v606_v29 = vsel %vm601_vm2, %v600_v28, 0 }
 0x175   : > { %2094 = vmatpush3.bf16.xpose.msra.mxu1 %v606_v29 }
 0x176   : > { %2099 = vmatprep.subr.bf16.mxu1 %v2304_v1 }
 0x177   : > { %v650_v31 = vpop.permute.xlu0 %649 }
 0x178   : > { %v655_v33 = vsel %vm601_vm2, %v650_v31, 0 }
 0x17c   : > { %2096 = vmatmul.mubr.msk.bf16.vlgmr.msra.gmra.mxu1 %vm601_vm2, %v2468_v32 }
 0x17d   : > { %2100 = vmatpush3.bf16.xpose.msra.mxu1 %v655_v33  ;;  %2101 = vmatprep.mubr.msk.bf16.mxu1 %vm2305_vm1, %v2304_v1 }
 0x17e   : > { %2105 = vmatprep.subr.bf16.mxu1 %v2304_v1 }
 0x184   : > { %2102 = vmatmul.mubr.msk.bf16.vlgmr.msra.gmra.mxu1 %vm601_vm2, %v2476_v35 }
 0x185   : > { %2107 = vmatprep.mubr.msk.bf16.mxu1 %vm2305_vm1, %v2304_v1 }
 0x23c   : > { %v642_v36 = vpop.f32.mrf.mxu1 }
 0x23d   : > { %v697_v37 = vsel %vm601_vm2, %v642_v36, -inf }
 0x23e   : > { %698 = vmax.xlane.f32.xlu1 %v697_v37  ;;  %v2097_v38 = vpop.f32.mrf.mxu1 }
 0x240   : > { %v645_v39 = vpop.f32.mrf.mxu1 }
 0x242   : > { %v2098_v40 = vpop.f32.mrf.mxu1 }
 0x244   : > { %v691_v41 = vpop.f32.mrf.mxu1 }
 0x245   : > { %v700_v42 = vsel %vm601_vm2, %v691_v41, -inf }
 0x246   : > { %701 = vmax.xlane.f32.xlu1 %v700_v42  ;;  %v2103_v43 = vpop.f32.mrf.mxu1 }
 0x248   : > { %v694_v44 = vpop.f32.mrf.mxu1 }
 0x24a   : > { %v2104_v45 = vpop.f32.mrf.mxu1 }
 0x257   : > { %721 = vrot.lane.b32.xlu1 %v2460_v23, %s2307_s22 }
 0x25b   : > { %770 = vrot.lane.b32.xlu1 %v2463_v27, %s2307_s22 }
 0x2c7   : > { %v699_v46 = vpop.xlane.xlu1 %698 }
 0x2c8   : > { %v703_v47 = vsub.f32 %v642_v36, %v699_v46 }
 0x2ca   : > { %v705_v48 = vmul.f32 1.442695, %v703_v47 }
 0x2cc   : > { %2256 = vpow2.f32 %v705_v48 }
 0x2cf   : > { %v702_v49 = vpop.xlane.xlu1 %701 }
 0x2d0   : > { %v704_v50 = vsub.f32 %v691_v41, %v702_v49 }
 0x2d2   : > { %v707_v51 = vmul.f32 1.442695, %v704_v50 }
 0x2d3   : > { %v722_v52 = vpop.permute.xlu1 %721 }
 0x2d4   : > { %2258 = vpow2.f32 %v707_v51  ;;  %v728_v53 = vsel %vm726_vm3, %v722_v52, 0 }
 0x2d5   : > { %2106 = vmatpush3.bf16.msra.mxu1 %v728_v53 }
 0x2d6   : > { %2111 = vmatprep.subr.bf16.mxu1 %v2304_v1 }
 0x2d7   : > { %v771_v59 = vpop.permute.xlu1 %770 }
 0x2d8   : > { %v776_v0 = vsel %vm726_vm3, %v771_v59, 0 }
 0x2d9   : > { %v2257_v54 = vpop.eup %2256 }
 0x2da   : > { %v709_v55 = vsel %vm601_vm2, %v2257_v54, 0.0 }
 0x2db   : > { %710 = vadd.xlane.f32.xlu0 %v709_v55 }
 0x2e1   : > { %v2259_v56 = vpop.eup %2258 }
 0x2e2   : > { %v712_v57 = vsel %vm601_vm2, %v2259_v56, 0.0 }
 0x2e3   : > { %713 = vadd.xlane.f32.xlu1 %v712_v57 }
 0x2f1   : > { %877 = vrot.lane.b32.xlu0 %v2463_v27, %s2308_s24 }
 0x2f4   : > { %826 = vrot.lane.b32.xlu1 %v2460_v23, %s2308_s24 }
 0x2f8   : > { %824 = vrot.lane.b32.xlu1 %v2468_v32, %s2309_s25 }
 0x2fc   : > { %875 = vrot.lane.b32.xlu1 %v2476_v35, %s2309_s25  ;;  %s2319_s25 = smov 24  }
 0x364   : > { %v711_v58 = vpop.xlane.xlu0 %710 }
 0x365   : > { %2260 = vrcp.f32 %v711_v58 }
 0x368   : > { %v878_v7 = vpop.permute.xlu0 %877 }
 0x369   : > { %v883_v9 = vsel %vm601_vm2, %v878_v7, 0 }
 0x36c   : > { %v714_v60 = vpop.xlane.xlu1 %713 }
 0x36d   : > { %2262 = vrcp.f32 %v714_v60 }
 0x370   : > { %v827_v4 = vpop.permute.xlu1 %826 }
 0x371   : > { %v832_v6 = vsel %vm601_vm2, %v827_v4, 0 }
 0x372   : > { %v2261_v61 = vpop.eup %2260 }
 0x373   : > { %v717_v62 = vmul.f32 %v2261_v61, %v2257_v54 }
 0x374   : > { %v825_v8 = vpop.permute.xlu1 %824 }
 0x375   : > { %v719_v63 = vpack.c.bf16 %v717_v62, %v717_v62 }
 0x377   : > { %2108 = vmatmul.mubr.msk.bf16.vlgmr.msra.gmra.mxu1 %vm601_vm2, %v719_v63 }
 0x378   : > { %2112 = vmatpush3.bf16.msra.mxu1 %v776_v0  ;;  %2113 = vmatprep.mubr.msk.bf16.mxu1 %vm2305_vm1, %v2304_v1  ;;  %v876_v10 = vpop.permute.xlu1 %875 }
 0x379   : > { %2117 = vmatprep.subr.bf16.mxu1 %v2304_v1 }
 0x37a   : > { %v2263_v2 = vpop.eup %2262 }
 0x37b   : > { %v718_v3 = vmul.f32 %v2263_v2, %v2259_v56 }
 0x37d   : > { %v720_v5 = vpack.c.bf16 %v718_v3, %v718_v3 }
 0x37f   : > { %2114 = vmatmul.mubr.msk.bf16.vlgmr.msra.gmra.mxu1 %vm601_vm2, %v720_v5 }
 0x380   : > { %2118 = vmatpush3.bf16.xpose.msra.mxu1 %v832_v6  ;;  %2119 = vmatprep.mubr.msk.bf16.mxu1 %vm2305_vm1, %v2304_v1 }
 0x381   : > { %2123 = vmatprep.subr.bf16.mxu1 %v2304_v1 }
 0x387   : > { %2120 = vmatmul.mubr.msk.bf16.vlgmr.msra.gmra.mxu1 %vm601_vm2, %v825_v8 }
 0x388   : > { %2124 = vmatpush3.bf16.xpose.msra.mxu1 %v883_v9  ;;  %2125 = vmatprep.mubr.msk.bf16.mxu1 %vm2305_vm1, %v2304_v1 }
 0x389   : > { %2135 = vmatprep.subr.bf16.mxu1 %v2304_v1 }
 0x38f   : > { %2126 = vmatmul.mubr.msk.bf16.vlgmr.msra.gmra.mxu1 %vm601_vm2, %v876_v10 }
 0x390   : > { %2137 = vmatprep.mubr.msk.bf16.mxu1 %vm2305_vm1, %v2304_v1 }
 0x437   : > { %v764_v11 = vpop.f32.mrf.mxu1 }
 0x438   : > { %v818_v12 = vpack.c.bf16 %v764_v11, %v764_v11 }
 0x439   : > { %v2109_v13 = vpop.f32.mrf.mxu1 }
 0x43a   : > { %821 = vst.msk [vmem:[#allocation2] sm:$0xf] %vm820_vm4, %v818_v12 }
 0x43b   : > { %v767_v14 = vpop.f32.mrf.mxu1 }
 0x43d   : > { %v2110_v15 = vpop.f32.mrf.mxu1 }
 0x43f   : > { %v812_v18 = vpop.f32.mrf.mxu1 }
 0x440   : > { %v819_v19 = vpack.c.bf16 %v812_v18, %v812_v18 }
 0x441   : > { %v2115_v20 = vpop.f32.mrf.mxu1 }
 0x442   : > { %822 = vst.msk [vmem:[#allocation2 + $0x4] sm:$0xf] %vm820_vm4, %v819_v19 }
 0x443   : > { %v815_v21 = vpop.f32.mrf.mxu1 }
 0x445   : > { %v2116_v22 = vpop.f32.mrf.mxu1 }
 0x447   : > { %v868_v24 = vpop.f32.mrf.mxu1 }
 0x448   : > { %v925_v25 = vsel %vm601_vm2, %v868_v24, -inf }
 0x449   : > { %926 = vmax.xlane.f32.xlu1 %v925_v25  ;;  %v2121_v26 = vpop.f32.mrf.mxu1 }
 0x44b   : > { %v871_v28 = vpop.f32.mrf.mxu1 }
 0x44d   : > { %v2122_v29 = vpop.f32.mrf.mxu1 }
 0x44f   : > { %v919_v30 = vpop.f32.mrf.mxu1 }
 0x450   : > { %v928_v31 = vsel %vm601_vm2, %v919_v30, -inf }
 0x451   : > { %929 = vmax.xlane.f32.xlu0 %v928_v31  ;;  %v2127_v33 = vpop.f32.mrf.mxu1 }
 0x453   : > { %v922_v34 = vpop.f32.mrf.mxu1 }
 0x455   : > { %v2128_v36 = vpop.f32.mrf.mxu1 }
 0x45a   : > { %949 = vrot.lane.b32.xlu1 %v2460_v23, %s2310_s26 }
 0x45e   : > { %1064 = vrot.lane.b32.xlu1 %v2460_v23, %s2311_s27 }
 0x467   : > { %997 = vrot.lane.b32.xlu0 %v2463_v27, %s2310_s26  ;;  %s467_s26 = scalar_lea.vmem %s2695_s14, %s2697_s23 }
 0x46b   : > { %1062 = vrot.lane.b32.xlu0 %v2468_v32, %s2312_s28 }
 0x4d2   : > { %v927_v37 = vpop.xlane.xlu1 %926 }
 0x4d3   : > { %v931_v38 = vsub.f32 %v868_v24, %v927_v37 }
 0x4d5   : > { %v933_v39 = vmul.f32 1.442695, %v931_v38 }
 0x4d6   : > { %v950_v40 = vpop.permute.xlu1 %949 }
 0x4d7   : > { %2264 = vpow2.f32 %v933_v39  ;;  %v955_v41 = vsel %vm726_vm3, %v950_v40, 0 }
 0x4d8   : > { %2130 = vmatpush3.bf16.msra.mxu0 %v955_v41 }
 0x4d9   : > { %2141 = vmatprep.subr.bf16.mxu0 %v2304_v1 }
 0x4da   : > { %v930_v42 = vpop.xlane.xlu0 %929  ;;  %v1065_v51 = vpop.permute.xlu1 %1064 }
 0x4db   : > { %v932_v43 = vsub.f32 %v919_v30, %v930_v42  ;;  %v1070_v57 = vsel %vm601_vm2, %v1065_v51, 0 }
 0x4dd   : > { %v935_v44 = vmul.f32 1.442695, %v932_v43 }
 0x4de   : > { %v998_v45 = vpop.permute.xlu0 %997 }
 0x4df   : > { %2266 = vpow2.f32 %v935_v44  ;;  %v1003_v46 = vsel %vm726_vm3, %v998_v45, 0 }
 0x4e0   : > { %2136 = vmatpush3.bf16.msra.mxu1 %v1003_v46 }
 0x4e1   : > { %2147 = vmatprep.subr.bf16.mxu1 %v2304_v1 }
 0x4e2   : > { %v1063_v62 = vpop.permute.xlu0 %1062 }
 0x4e4   : > { %v2265_v47 = vpop.eup %2264 }
 0x4e5   : > { %v937_v48 = vsel %vm601_vm2, %v2265_v47, 0.0 }
 0x4e6   : > { %938 = vadd.xlane.f32.xlu1 %v937_v48 }
 0x4ec   : > { %v2267_v49 = vpop.eup %2266 }
 0x4ed   : > { %v940_v50 = vsel %vm601_vm2, %v2267_v49, 0.0 }
 0x4ee   : > { %941 = vadd.xlane.f32.xlu1 %v940_v50 }
 0x4ff   : > { %1114 = vrot.lane.b32.xlu1 %v2463_v27, %s2311_s27 }
 0x503   : > { %1112 = vrot.lane.b32.xlu1 %v2476_v35, %s2312_s28 }
 0x56f   : > { %v939_v52 = vpop.xlane.xlu1 %938 }
 0x570   : > { %2268 = vrcp.f32 %v939_v52 }
 0x577   : > { %v942_v53 = vpop.xlane.xlu1 %941 }
 0x578   : > { %2270 = vrcp.f32 %v942_v53 }
 0x57b   : > { %v1115_v60 = vpop.permute.xlu1 %1114 }
 0x57c   : > { %v1120_v63 = vsel %vm601_vm2, %v1115_v60, 0 }
 0x57d   : > { %v2269_v54 = vpop.eup %2268 }
 0x57e   : > { %v945_v55 = vmul.f32 %v2269_v54, %v2265_v47 }
 0x57f   : > { %v1113_v0 = vpop.permute.xlu1 %1112 }
 0x580   : > { %v947_v56 = vpack.c.bf16 %v945_v55, %v945_v55 }
 0x582   : > { %2132 = vmatmul.mubr.msk.bf16.vlgmr.msra.gmra.mxu0 %vm601_vm2, %v947_v56 }
 0x583   : > { %2142 = vmatpush3.bf16.xpose.msra.mxu0 %v1070_v57  ;;  %2143 = vmatprep.mubr.msk.bf16.mxu0 %vm2305_vm1, %v2304_v1 }
 0x584   : > { %2153 = vmatprep.subr.bf16.mxu0 %v2304_v1 }
 0x585   : > { %v2271_v58 = vpop.eup %2270 }
 0x586   : > { %v946_v59 = vmul.f32 %v2271_v58, %v2267_v49 }
 0x588   : > { %v948_v61 = vpack.c.bf16 %v946_v59, %v946_v59 }
 0x58a   : > { %2138 = vmatmul.mubr.msk.bf16.vlgmr.msra.gmra.mxu1 %vm601_vm2, %v948_v61  ;;  %2144 = vmatmul.mubr.msk.bf16.vlgmr.msra.gmra.mxu0 %vm601_vm2, %v1063_v62 }
 0x58b   : > { %2148 = vmatpush3.bf16.xpose.msra.mxu1 %v1120_v63  ;;  %2149 = vmatprep.mubr.msk.bf16.mxu1 %vm2305_vm1, %v2304_v1 }
 0x58c   : > { %2159 = vmatprep.subr.bf16.mxu1 %v2304_v1  ;;  %2155 = vmatprep.mubr.msk.bf16.mxu0 %vm2305_vm1, %v2304_v1 }
 0x592   : > { %2150 = vmatmul.mubr.msk.bf16.vlgmr.msra.gmra.mxu1 %vm601_vm2, %v1113_v0 }
 0x593   : > { %2161 = vmatprep.mubr.msk.bf16.mxu1 %vm2305_vm1, %v2304_v1 }
 0x642   : > { %v2542_v2 = vpop.f32.mrf.mxu0 }
 0x644   : > { %v2133_v3 = vpop.f32.mrf.mxu0 }
 0x646   : > { %v994_v4 = vpop.f32.mrf.mxu0 }
 0x648   : > { %v2134_v5 = vpop.f32.mrf.mxu0 }
 0x64a   : > { %v2544_v6 = vpop.f32.mrf.mxu1  ;;  %v1106_v7 = vpop.f32.mrf.mxu0 }
 0x64b   : > { %v1162_v8 = vsel %vm601_vm2, %v1106_v7, -inf }
 0x64c   : > { %v2139_v9 = vpop.f32.mrf.mxu1  ;;  %1163 = vmax.xlane.f32.xlu0 %v1162_v8  ;;  %v2145_v10 = vpop.f32.mrf.mxu0 }
 0x64d   : > { %v2017_v9 = vpack.c.bf16 %v2542_v2, %v2542_v2  ;;  %v2018_v10 = vpack.c.bf16 %v2544_v6, %v2544_v6 }
 0x64e   : > { %v1042_v11 = vpop.f32.mrf.mxu1  ;;  %v1109_v12 = vpop.f32.mrf.mxu0 }
 0x650   : > { %v2140_v13 = vpop.f32.mrf.mxu1  ;;  %v2146_v14 = vpop.f32.mrf.mxu0 }
 0x652   : > { %v1156_v15 = vpop.f32.mrf.mxu1 }
 0x653   : > { %v1165_v18 = vsel %vm601_vm2, %v1156_v15, -inf }
 0x654   : > { %1166 = vmax.xlane.f32.xlu1 %v1165_v18  ;;  %v2151_v19 = vpop.f32.mrf.mxu1 }
 0x656   : > { %v1159_v20 = vpop.f32.mrf.mxu1 }
 0x658   : > { %v2152_v21 = vpop.f32.mrf.mxu1 }
 0x665   : > { %1186 = vrot.lane.b32.xlu1 %v2460_v23, %s2313_s30 }
 0x669   : > { %1301 = vrot.lane.b32.xlu1 %v2460_v23, %s2314_s15 }
 0x66d   : > { %1351 = vrot.lane.b32.xlu1 %v2463_v27, %s2314_s15 }
 0x671   : > { %1349 = vrot.lane.b32.xlu1 %v2476_v35, %s2315_s16 }
 0x6d5   : > { %v1164_v22 = vpop.xlane.xlu0 %1163 }
 0x6d6   : > { %v1168_v24 = vsub.f32 %v1106_v7, %v1164_v22 }
 0x6d8   : > { %v1170_v25 = vmul.f32 1.442695, %v1168_v24 }
 0x6da   : > { %2272 = vpow2.f32 %v1170_v25 }
 0x6dd   : > { %v1167_v26 = vpop.xlane.xlu1 %1166 }
 0x6de   : > { %v1169_v28 = vsub.f32 %v1156_v15, %v1167_v26 }
 0x6e0   : > { %v1172_v29 = vmul.f32 1.442695, %v1169_v28 }
 0x6e1   : > { %v1187_v30 = vpop.permute.xlu1 %1186 }
 0x6e2   : > { %2274 = vpow2.f32 %v1172_v29  ;;  %v1192_v31 = vsel %vm726_vm3, %v1187_v30, 0 }
 0x6e3   : > { %2154 = vmatpush3.bf16.msra.mxu0 %v1192_v31 }
 0x6e4   : > { %2165 = vmatprep.subr.bf16.mxu0 %v2304_v1 }
 0x6e5   : > { %v1302_v43 = vpop.permute.xlu1 %1301 }
 0x6e6   : > { %v1307_v45 = vsel %vm601_vm2, %v1302_v43, 0 }
 0x6e7   : > { %v2273_v33 = vpop.eup %2272 }
 0x6e8   : > { %v1174_v34 = vsel %vm601_vm2, %v2273_v33, 0.0 }
 0x6e9   : > { %1175 = vadd.xlane.f32.xlu0 %v1174_v34  ;;  %v1352_v47 = vpop.permute.xlu1 %1351 }
 0x6ea   : > { %v1357_v50 = vsel %vm601_vm2, %v1352_v47, 0 }
 0x6ed   : > { %v1350_v51 = vpop.permute.xlu1 %1349 }
 0x6ef   : > { %v2275_v36 = vpop.eup %2274 }
 0x6f0   : > { %v1177_v35 = vsel %vm601_vm2, %v2275_v36, 0.0 }
 0x6f1   : > { %1178 = vadd.xlane.f32.xlu0 %v1177_v35 }
 0x707   : > { %1234 = vrot.lane.b32.xlu0 %v2463_v27, %s2313_s30 }
 0x70b   : > { %1299 = vrot.lane.b32.xlu0 %v2468_v32, %s2315_s16 }
 0x772   : > { %v1176_v37 = vpop.xlane.xlu0 %1175 }
 0x773   : > { %2276 = vrcp.f32 %v1176_v37 }
 0x77a   : > { %v1179_v38 = vpop.xlane.xlu0 %1178 }
 0x77b   : > { %2278 = vrcp.f32 %v1179_v38 }
 0x77e   : > { %v1235_v39 = vpop.permute.xlu0 %1234 }
 0x77f   : > { %v1240_v40 = vsel %vm726_vm3, %v1235_v39, 0 }
 0x780   : > { %v2277_v41 = vpop.eup %2276  ;;  %2160 = vmatpush3.bf16.msra.mxu1 %v1240_v40  ;;  %v2247_v40 = vld [vmem:[%s2685_s4 + $0x8] sm:$0xff]  }
 0x781   : > { %v1182_v42 = vmul.f32 %v2277_v41, %v2273_v33  ;;  %2171 = vmatprep.subr.bf16.mxu1 %v2304_v1  ;;  %v1571_v41 = vsel %vm529_vm0, %v2247_v40, 0 }
 0x782   : > { %v1300_v49 = vpop.permute.xlu0 %1299 }
 0x783   : > { %v1184_v44 = vpack.c.bf16 %v1182_v42, %v1182_v42  ;;  %v2248_v42 = vld [vmem:[%s2685_s4] sm:$0xff]  }
 0x785   : > { %2156 = vmatmul.mubr.msk.bf16.vlgmr.msra.gmra.mxu0 %vm601_vm2, %v1184_v44  ;;  %v1568_v44 = vsel %vm529_vm0, %v2248_v42, 0 }
 0x786   : > { %2166 = vmatpush3.bf16.xpose.msra.mxu0 %v1307_v45  ;;  %2167 = vmatprep.mubr.msk.bf16.mxu0 %vm2305_vm1, %v2304_v1 }
 0x787   : > { %2177 = vmatprep.subr.bf16.mxu0 %v2304_v1 }
 0x788   : > { %v2279_v32 = vpop.eup %2278 }
 0x789   : > { %v1183_v46 = vmul.f32 %v2279_v32, %v2275_v36 }
 0x78b   : > { %v1185_v48 = vpack.c.bf16 %v1183_v46, %v1183_v46 }
 0x78d   : > { %2162 = vmatmul.mubr.msk.bf16.vlgmr.msra.gmra.mxu1 %vm601_vm2, %v1185_v48  ;;  %2168 = vmatmul.mubr.msk.bf16.vlgmr.msra.gmra.mxu0 %vm601_vm2, %v1300_v49 }
 0x78e   : > { %2172 = vmatpush3.bf16.xpose.msra.mxu1 %v1357_v50  ;;  %2173 = vmatprep.mubr.msk.bf16.mxu1 %vm2305_vm1, %v2304_v1 }
 0x78f   : > { %2183 = vmatprep.subr.bf16.mxu1 %v2304_v1  ;;  %2179 = vmatprep.mubr.msk.bf16.mxu0 %vm2305_vm1, %v2304_v1 }
 0x795   : > { %2174 = vmatmul.mubr.msk.bf16.vlgmr.msra.gmra.mxu1 %vm601_vm2, %v1350_v51 }
 0x796   : > { %2185 = vmatprep.mubr.msk.bf16.mxu1 %vm2305_vm1, %v2304_v1 }
 0x845   : > { %v1228_v52 = vpop.f32.mrf.mxu0 }
 0x846   : > { %v2019_v28 = vpack.c.bf16 %v1228_v52, %v1228_v52 }
 0x847   : > { %v2157_v53 = vpop.f32.mrf.mxu0 }
 0x849   : > { %v1231_v54 = vpop.f32.mrf.mxu0 }
 0x84b   : > { %v2158_v55 = vpop.f32.mrf.mxu0 }
 0x84d   : > { %v1276_v56 = vpop.f32.mrf.mxu1  ;;  %v1343_v57 = vpop.f32.mrf.mxu0 }
 0x84e   : > { %v1399_v58 = vsel %vm601_vm2, %v1343_v57, -inf  ;;  %v2020_v11 = vpack.c.bf16 %v1276_v56, %v1276_v56  ;;  %v1992_v56 = vld [vmem:[%s2686_s5] ss:$0 sm:$0xff] }
 0x84f   : > { %v2163_v59 = vpop.f32.mrf.mxu1  ;;  %1400 = vmax.xlane.f32.xlu0 %v1399_v58  ;;  %v2169_v60 = vpop.f32.mrf.mxu0 }
 0x851   : > { %v1279_v61 = vpop.f32.mrf.mxu1  ;;  %v1346_v62 = vpop.f32.mrf.mxu0 }
 0x853   : > { %v2164_v63 = vpop.f32.mrf.mxu1  ;;  %v2170_v0 = vpop.f32.mrf.mxu0 }
 0x855   : > { %v1393_v3 = vpop.f32.mrf.mxu1 }
 0x856   : > { %v1402_v4 = vsel %vm601_vm2, %v1393_v3, -inf }
 0x857   : > { %1403 = vmax.xlane.f32.xlu1 %v1402_v4  ;;  %v2175_v5 = vpop.f32.mrf.mxu1 }
 0x859   : > { %v1396_v7 = vpop.f32.mrf.mxu1 }
 0x85b   : > { %v2176_v8 = vpop.f32.mrf.mxu1 }
 0x868   : > { %1423 = vrot.lane.b32.xlu1 %v2460_v23, %s2316_s17 }
 0x86c   : > { %1053 = vrot.lane.b32.xlu1 %v2017_v9, %s2317_s18 }
 0x870   : > { %1055 = vrot.lane.b32.xlu1 %v2018_v10, %s2317_s18  ;;  %v2250_v10 = vld [vmem:[%s2689_s8 + $0x18] sm:$0xff]  }
 0x874   : > { %1292 = vrot.lane.b32.xlu1 %v2020_v11, %s2318_s19  ;;  %v1720_v11 = vsel %vm529_vm0, %v2250_v10, 0 }
 0x8d8   : > { %v1401_v12 = vpop.xlane.xlu0 %1400 }
 0x8d9   : > { %v1405_v13 = vsub.f32 %v1343_v57, %v1401_v12 }
 0x8db   : > { %v1407_v14 = vmul.f32 1.442695, %v1405_v13 }
 0x8dd   : > { %2280 = vpow2.f32 %v1407_v14 }
 0x8e0   : > { %v1404_v15 = vpop.xlane.xlu1 %1403 }
 0x8e1   : > { %v1406_v18 = vsub.f32 %v1393_v3, %v1404_v15 }
 0x8e3   : > { %v1409_v19 = vmul.f32 1.442695, %v1406_v18 }
 0x8e4   : > { %v1424_v23 = vpop.permute.xlu1 %1423 }
 0x8e5   : > { %2282 = vpow2.f32 %v1409_v19  ;;  %v1429_v2 = vsel %vm726_vm3, %v1424_v23, 0 }
 0x8e6   : > { %2178 = vmatpush3.bf16.msra.mxu0 %v1429_v2 }
 0x8e7   : > { %2189 = vmatprep.subr.bf16.mxu0 %v2304_v1 }
 0x8e8   : > { %v1054_v6 = vpop.permute.xlu1 %1053 }
 0x8e9   : > { %1060 = vst.msk [vmem:[#allocation2] sm:$0xf] %vm1059_vm5, %v1054_v6  ;;  %v2251_v6 = vld [vmem:[%s2689_s8 + $0x10] sm:$0xff]  }
 0x8ea   : > { %v2281_v20 = vpop.eup %2280 }
 0x8eb   : > { %v1411_v21 = vsel %vm601_vm2, %v2281_v20, 0.0 }
 0x8ec   : > { %v1056_v22 = vpop.permute.xlu1 %1055  ;;  %1412 = vadd.xlane.f32.xlu0 %v1411_v21  ;;  %v2252_v21 = vld [vmem:[%s2689_s8 + $0x8] sm:$0xff]  }
 0x8ed   : > { %1061 = vst.msk [vmem:[#allocation2 + $0x4] sm:$0xf] %vm1059_vm5, %v1056_v22  ;;  %v1714_v22 = vsel %vm529_vm0, %v2252_v21, 0 }
 0x8f0   : > { %v1293_v24 = vpop.permute.xlu1 %1292 }
 0x8f1   : > { %1298 = vst.msk [vmem:[#allocation2 + $0x4] sm:$0xf] %vm1296_vm6, %v1293_v24  ;;  %v2253_v24 = vld [vmem:[%s2689_s8] sm:$0xff]  }
 0x8f2   : > { %v2283_v25 = vpop.eup %2282 }
 0x8f3   : > { %v1414_v26 = vsel %vm601_vm2, %v2283_v25, 0.0 }
 0x8f4   : > { %1415 = vadd.xlane.f32.xlu0 %v1414_v26  ;;  %v2254_v26 = vld [vmem:[%s2691_s10 + $0x8] sm:$0xff]  }
 0x90a   : > { %1471 = vrot.lane.b32.xlu0 %v2463_v27, %s2316_s17 }
 0x90e   : > { %1290 = vrot.lane.b32.xlu0 %v2019_v28, %s2318_s19  ;;  %v1795_v28 = vsel %vm1787_vm8, %v2254_v26, 0  ;;  %v2012_v26 = vld [vmem:[%s2694_s13] ss:$0 sm:$0xff] }
 0x975   : > { %v1413_v29 = vpop.xlane.xlu0 %1412 }
 0x976   : > { %2284 = vrcp.f32 %v1413_v29 }
 0x97d   : > { %v1416_v30 = vpop.xlane.xlu0 %1415 }
 0x97e   : > { %2286 = vrcp.f32 %v1416_v30 }
 0x981   : > { %v1472_v31 = vpop.permute.xlu0 %1471 }
 0x982   : > { %v1477_v33 = vsel %vm726_vm3, %v1472_v31, 0 }
 0x983   : > { %v2285_v34 = vpop.eup %2284  ;;  %2184 = vmatpush3.bf16.msra.mxu1 %v1477_v33 }
 0x984   : > { %v1419_v36 = vmul.f32 %v2285_v34, %v2281_v20  ;;  %2197 = vmatprep.subr.bf16.mxu1 %v2304_v1  ;;  %v1717_v20 = vsel %vm529_vm0, %v2251_v6, 0 }
 0x985   : > { %v1291_v35 = vpop.permute.xlu0 %1290 }
 0x986   : > { %1297 = vst.msk [vmem:[#allocation2] sm:$0xf] %vm1296_vm6, %v1291_v35  ;;  %v1421_v37 = vpack.c.bf16 %v1419_v36, %v1419_v36 }
 0x988   : > { %2180 = vmatmul.mubr.msk.bf16.vlgmr.msra.gmra.mxu0 %vm601_vm2, %v1421_v37 }
 0x989   : > { %2193 = vmatprep.mubr.msk.bf16.mxu0 %vm2305_vm1, %v2304_v1  ;;  %2190 = vmatpush3.bf16.xpose.msra.mxu0 %v1571_v41 }
 0x98a   : > { %2191 = vmatprep.subr.bf16.mxu0 %v2304_v1 }
 0x98b   : > { %v2287_v27 = vpop.eup %2286 }
 0x98c   : > { %v1420_v38 = vmul.f32 %v2287_v27, %v2283_v25  ;;  %v1711_v25 = vsel %vm529_vm0, %v2253_v24, 0  ;;  %v1999_v27 = vld [vmem:[%s2687_s6] ss:$0 sm:$0xff] }
 0x98e   : > { %v1422_v39 = vpack.c.bf16 %v1420_v38, %v1420_v38 }
 0x990   : > { %2186 = vmatmul.mubr.msk.bf16.vlgmr.msra.gmra.mxu1 %vm601_vm2, %v1422_v39 }
 0x991   : > { %2205 = vmatprep.mubr.msk.bf16.mxu1 %vm2305_vm1, %v2304_v1  ;;  %2192 = vmatpush3.bf16.xpose.msra.mxu0 %v1568_v44 }
 0x992   : > { %2209 = vmatprep.subr.bf16.mxu0 %v2304_v1  ;;  %2198 = vmatpush3.bf16.xpose.msra.mxu1 %v1720_v11 }
 0x993   : > { %2199 = vmatprep.subr.bf16.mxu1 %v2304_v1 }
 0x99a   : > { %2200 = vmatpush3.bf16.xpose.msra.mxu1 %v1717_v20 }
 0x99b   : > { %2201 = vmatprep.subr.bf16.mxu1 %v2304_v1 }
 0x9a2   : > { %2202 = vmatpush3.bf16.xpose.msra.mxu1 %v1714_v22  ;;  %v2011_v22 = vld [vmem:[%s2693_s12] ss:$0 sm:$0xff] }
 0x9a3   : > { %2203 = vmatprep.subr.bf16.mxu1 %v2304_v1 }
 0x9aa   : > { %2204 = vmatpush3.bf16.xpose.msra.mxu1 %v1711_v25 }
 0xa48   : > { %v1465_v43 = vpop.f32.mrf.mxu0 }
 0xa49   : > { %v2021_v45 = vpack.c.bf16 %v1465_v43, %v1465_v43 }
 0xa4a   : > { %v2181_v32 = vpop.f32.mrf.mxu0 }
 0xa4b   : > { %1527 = vrot.lane.b32.xlu0 %v2021_v45, %s2319_s25  ;;  %v2255_v45 = vld [vmem:[%s2691_s10] sm:$0xff]  }
 0xa4c   : > { %v1468_v46 = vpop.f32.mrf.mxu0  ;;  %v1792_v32 = vsel %vm1787_vm8, %v2255_v45, 0 }
 0xa4d   : > { %v2001_v46 = vld [vmem:[%s2690_s9] ss:$0 sm:$0xff] }
 0xa4e   : > { %v2182_v47 = vpop.f32.mrf.mxu0 }
 0xa50   : > { %v1513_v48 = vpop.f32.mrf.mxu1 }
 0xa51   : > { %v2022_v49 = vpack.c.bf16 %v1513_v48, %v1513_v48 }
 0xa52   : > { %v2187_v50 = vpop.f32.mrf.mxu1 }
 0xa53   : > { %1529 = vrot.lane.b32.xlu1 %v2022_v49, %s2319_s25 }
 0xa54   : > { %v1516_v51 = vpop.f32.mrf.mxu1 }
 0xa56   : > { %v2188_v52 = vpop.f32.mrf.mxu1 }
 0xabd   : > { %v1528_v53 = vpop.permute.xlu0 %1527 }
 0xabe   : > { %1534 = vst.msk [vmem:[#allocation2] sm:$0xf] %vm1533_vm7, %v1528_v53 }
 0xac5   : > { %v1530_v54 = vpop.permute.xlu1 %1529 }
 0xac6   : > { %1535 = vst.msk [vmem:[#allocation2 + $0x4] sm:$0xf] %vm1533_vm7, %v1530_v54 }
 0xacd   : > { %v2249_v55 = vld [vmem:[#allocation2] sm:$0xff]  }
 0xace   : > { %2194 = vmatmul.mubr.msk.bf16.vlgmr.msra.gmra.mxu0 %vm529_vm0, %v2249_v55 }
 0xacf   : > { %2213 = vmatprep.mubr.msk.bf16.mxu0 %vm2305_vm1, %v2304_v1  ;;  %2210 = vmatpush3.bf16.xpose.msra.mxu0 %v1795_v28 }
 0xad0   : > { %2211 = vmatprep.subr.bf16.mxu0 %v2304_v1  ;;  %v2000_v1 = vld [vmem:[%s2688_s7] ss:$0 sm:$0xff] }
 0xad7   : > { %2212 = vmatpush3.bf16.xpose.msra.mxu0 %v1792_v32 }
 0xb8e   : > { %v1607_v57 = vpop.f32.mrf.mxu0 }
 0xb8f   : > { %v1608_v58 = vadd.f32 %v1992_v56, %v1607_v57  ;;  %v2007_v57 = vld [vmem:[%s2692_s11] ss:$0 sm:$0xff] }
 0xb90   : > { %v2195_v59 = vpop.f32.mrf.mxu0 }
 0xb91   : > { %v2023_v60 = vpack.c.bf16 %v1608_v58, %v1608_v58 }
 0xb92   : > { %v1610_v61 = vpop.f32.mrf.mxu0 }
 0xb93   : > { %v1611_v62 = vadd.f32 %v1992_v56, %v1610_v61  ;;  %v1622_v63 = vadd.bf16 %v2023_v60, %v2447_v16 }
 0xb94   : > { %v2196_v0 = vpop.f32.mrf.mxu0 }
 0xb95   : > { %v2024_v3 = vpack.c.bf16 %v1611_v62, %v1611_v62  ;;  %v1626_v4 = vunpack.c.l.bf16 %v1622_v63 }
 0xb97   : > { %v1628_v5 = vsel %vm529_vm0, %v1626_v4, 0.0  ;;  %v1623_v7 = vadd.bf16 %v2024_v3, %v2449_v17 }
 0xb98   : > { %1629 = vadd.xlane.f32.xlu0 %v1628_v5 }
 0xb99   : > { %v1627_v8 = vunpack.c.l.bf16 %v1623_v7 }
 0xb9b   : > { %v1631_v9 = vsel %vm529_vm0, %v1627_v8, 0.0 }
 0xb9c   : > { %1632 = vadd.xlane.f32.xlu1 %v1631_v9 }
 0xc21   : > { %v1630_v16 = vpop.xlane.xlu0 %1629 }
 0xc22   : > { %v1635_v12 = vmul.f32 0.03125, %v1630_v16 }
 0xc24   : > { %v1637_v13 = vsub.f32 %v1626_v4, %v1635_v12 }
 0xc25   : > { %v1633_v14 = vpop.xlane.xlu1 %1632 }
 0xc26   : > { %v1636_v15 = vmul.f32 0.03125, %v1633_v14  ;;  %v1639_v17 = vmul.f32 %v1637_v13, %v1637_v13 }
 0xc28   : > { %v1638_v18 = vsub.f32 %v1627_v8, %v1636_v15  ;;  %v1641_v19 = vsel %vm529_vm0, %v1639_v17, 0.0 }
 0xc29   : > { %1642 = vadd.xlane.f32.xlu0 %v1641_v19 }
 0xc2a   : > { %v1640_v23 = vmul.f32 %v1638_v18, %v1638_v18 }
 0xc2c   : > { %v1644_v2 = vsel %vm529_vm0, %v1640_v23, 0.0 }
 0xc2d   : > { %1645 = vadd.xlane.f32.xlu0 %v1644_v2 }
 0xcb2   : > { %v1643_v29 = vpop.xlane.xlu0 %1642 }
 0xcb3   : > { %v1647_v30 = vmul.f32 0.03125, %v1643_v29 }
 0xcb5   : > { %v1649_v31 = vadd.f32 1e-05, %v1647_v30 }
 0xcb6   : > { %v1646_v33 = vpop.xlane.xlu0 %1645 }
 0xcb7   : > { %2288 = vrsqrt.f32 %v1649_v31  ;;  %v1648_v34 = vmul.f32 0.03125, %v1646_v33  ;;  %v1897_v31 = vld [vmem:[%s467_s26] sm:$0x1] }
 0xcb9   : > { %v1650_v36 = vadd.f32 1e-05, %v1648_v34 }
 0xcbb   : > { %2290 = vrsqrt.f32 %v1650_v36 }
 0xcc4   : > { %v2289_v35 = vpop.eup %2288 }
 0xcc5   : > { %v1653_v37 = vmul.f32 %v2289_v35, %v1637_v13 }
 0xcc7   : > { %v1661_v40 = vmul.f32 %v1999_v27, %v1653_v37 }
 0xcc8   : > { %v2291_v38 = vpop.eup %2290 }
 0xcc9   : > { %v1654_v39 = vmul.f32 %v2291_v38, %v1638_v18  ;;  %v1669_v42 = vadd.f32 %v2000_v1, %v1661_v40 }
 0xccb   : > { %v1662_v41 = vmul.f32 %v1999_v27, %v1654_v39  ;;  %v1900_v27 = vld [vmem:[%s467_s26 + $0x1] sm:$0x1] }
 0xccd   : > { %v1670_v43 = vadd.f32 %v2000_v1, %v1662_v41 }
 0xccf   : > { %v1671_v44 = vpack.c.bf16 %v1670_v43, %v1669_v42 }
 0xcd1   : > { %2206 = vmatmul.mubr.msk.bf16.vlgmr.msra.gmra.mxu1 %vm529_vm0, %v1671_v44 }
 0xd91   : > { %v1756_v47 = vpop.f32.mrf.mxu1 }
 0xd92   : > { %v1757_v49 = vadd.f32 %v2001_v46, %v1756_v47 }
 0xd93   : > { %v2207_v48 = vpop.f32.mrf.mxu1 }
 0xd94   : > { %v1763_v53 = vmax.f32 %v1757_v49, 0.0 }
 0xd95   : > { %v1759_v50 = vpop.f32.mrf.mxu1 }
 0xd96   : > { %v1760_v51 = vadd.f32 %v2001_v46, %v1759_v50 }
 0xd97   : > { %v2208_v52 = vpop.f32.mrf.mxu1 }
 0xd98   : > { %v1764_v54 = vmax.f32 %v1760_v51, 0.0 }
 0xd9a   : > { %v1765_v55 = vpack.c.bf16 %v1764_v54, %v1763_v53 }
 0xd9c   : > { %2214 = vmatmul.mubr.msk.bf16.vlgmr.msra.gmra.mxu0 %vm1787_vm8, %v1765_v55 }
 0xe5c   : > { %v1831_v56 = vpop.f32.mrf.mxu0 }
 0xe5d   : > { %v1832_v60 = vadd.f32 %v2007_v57, %v1831_v56 }
 0xe5e   : > { %v2215_v58 = vpop.f32.mrf.mxu0 }
 0xe60   : > { %v1834_v59 = vpop.f32.mrf.mxu0 }
 0xe61   : > { %v1835_v61 = vadd.f32 %v2007_v57, %v1834_v59 }
 0xe62   : > { %v2216_v62 = vpop.f32.mrf.mxu0 }
 0xe63   : > { %v1838_v63 = vpack.c.bf16 %v1835_v61, %v1832_v60 }
 0xe65   : > { %v1839_v0 = vadd.bf16 %v1838_v63, %v1671_v44 }
 0xe67   : > { %v1843_v3 = vunpack.c.h.bf16 %v1839_v0  ;;  %v1842_v4 = vunpack.c.l.bf16 %v1839_v0 }
 0xe69   : > { %v1847_v5 = vsel %vm529_vm0, %v1843_v3, 0.0  ;;  %v1844_v7 = vsel %vm529_vm0, %v1842_v4, 0.0 }
 0xe6a   : > { %1848 = vadd.xlane.f32.xlu0 %v1847_v5  ;;  %1845 = vadd.xlane.f32.xlu1 %v1844_v7 }
 0xef3   : > { %v1849_v8 = vpop.xlane.xlu0 %1848  ;;  %v1846_v9 = vpop.xlane.xlu1 %1845 }
 0xef4   : > { %v1851_v10 = vmul.f32 0.03125, %v1849_v8  ;;  %v1850_v11 = vmul.f32 0.03125, %v1846_v9 }
 0xef6   : > { %v1853_v16 = vsub.f32 %v1843_v3, %v1851_v10  ;;  %v1852_v12 = vsub.f32 %v1842_v4, %v1850_v11 }
 0xef8   : > { %v1855_v13 = vmul.f32 %v1853_v16, %v1853_v16  ;;  %v1854_v14 = vmul.f32 %v1852_v12, %v1852_v12 }
 0xefa   : > { %v1859_v15 = vsel %vm529_vm0, %v1855_v13, 0.0  ;;  %v1856_v17 = vsel %vm529_vm0, %v1854_v14, 0.0 }
 0xefb   : > { %1860 = vadd.xlane.f32.xlu0 %v1859_v15  ;;  %1857 = vadd.xlane.f32.xlu1 %v1856_v17 }
 0xf84   : > { %v1861_v18 = vpop.xlane.xlu0 %1860  ;;  %v1858_v19 = vpop.xlane.xlu1 %1857 }
 0xf85   : > { %v1863_v23 = vmul.f32 0.03125, %v1861_v18  ;;  %v1862_v2 = vmul.f32 0.03125, %v1858_v19 }
 0xf87   : > { %v1865_v6 = vadd.f32 1e-05, %v1863_v23  ;;  %v1864_v20 = vadd.f32 1e-05, %v1862_v2 }
 0xf89   : > { %2292 = vrsqrt.f32 %v1864_v20 }
 0xf8a   : > { %2294 = vrsqrt.f32 %v1865_v6 }
 0xf96   : > { %v2293_v21 = vpop.eup %2292 }
 0xf97   : > { %v2295_v24 = vpop.eup %2294  ;;  %v1868_v25 = vmul.f32 %v2293_v21, %v1852_v12 }
 0xf98   : > { %v1869_v29 = vmul.f32 %v2295_v24, %v1853_v16 }
 0xf99   : > { %v1876_v28 = vmul.f32 %v2011_v22, %v1868_v25 }
 0xf9a   : > { %v1877_v34 = vmul.f32 %v2011_v22, %v1869_v29 }
 0xf9b   : > { %v1884_v30 = vadd.f32 %v2012_v26, %v1876_v28 }
 0xf9c   : > { %v1885_v35 = vadd.f32 %v2012_v26, %v1877_v34 }
 0xf9d   : > { %v2025_v33 = vpack.c.bf16 %v1884_v30, %v1884_v30 }
 0xf9e   : > { %v2026_v37 = vpack.c.bf16 %v1885_v35, %v1885_v35 }
 0xf9f   : > { %v1898_v36 = vsel %vm1896_vm11, %v2025_v33, %v1897_v31 }
 0xfa0   : > { %1899 = vst [vmem:[%s467_s26] sm:$0x1] %v1898_v36  ;;  %v1901_v38 = vsel %vm1896_vm11, %v2026_v37, %v1900_v27 }
 0xfa1   : > { %1902 = vst [vmem:[%s467_s26 + $0x1] sm:$0x1] %v1901_v38 }
 0xfa2 PF: > { %s24_s29 = sadd.s32 1, %s2302_s29  }
 0xfa3   : > { %p21_p4 = scmp.ge.s32.totalorder %s24_s29, 4  }
 0xfa5   :  { %23 = sbr.rel (!%p21_p4) target bundleno = 1 (0x1), region = 106 }

</bundles_post_ra>
